<compile_context>
chip_gen: v7x
topology: tpu7x:2x2x1
jax: 0.10.0
libtpu: 0.0.40
codegen_flags: <defaults>
</compile_context>

<pallas_src>
import math
from functools import partial

import jax
import jax.numpy as jnp
from jax.experimental import pallas as pl
from jax.experimental.pallas import tpu as pltpu


def _layer_norm(x, g, b, eps=1e-5):
    mean = jnp.mean(x, axis=-1, keepdims=True)
    var = jnp.mean((x - mean) ** 2, axis=-1, keepdims=True)
    return (x - mean) * jax.lax.rsqrt(var + eps) * g + b


# ----------------------------------------------------------------------------
# Fused SHR block kernel (one grid step == Bt batch elements, all 3 branches)
# ----------------------------------------------------------------------------
def _shr_block_kernel(x_ref,
                      ln1_g_ref, ln1_b_ref, wqkv_ref, wproj_ref, bproj_ref,
                      ln2_g_ref, ln2_b_ref, w1_ref, b1_ref, w2_ref, b2_ref,
                      o_ref, *, num_heads):
    _, Bt, N, C = x_ref.shape
    M = Bt * N
    hd = C // num_heads
    inv_sqrt2 = 1.0 / math.sqrt(2.0)

    # ---- three attention branches ------------------------------------------------
    ys = []
    for i in range(3):
        xb = x_ref[i].astype(jnp.float32)                     # (Bt, N, C)
        x2 = xb.reshape(M, C)                                  # flatten batch rows
        xn = _layer_norm(x2, ln1_g_ref[i], ln1_b_ref[i])       # (M, C) f32

        # single qkv projection (qkv_bias=False); q columns already carry 1/sqrt(hd)
        qkv = jnp.dot(xn.astype(jnp.bfloat16), wqkv_ref[i],
                      preferred_element_type=jnp.float32)      # (M, 3C) f32
        qkv_b = qkv.astype(jnp.bfloat16).reshape(Bt, N, 3 * C)

        head_outs = []
        for h in range(num_heads):
            qh = qkv_b[:, :, h * hd:(h + 1) * hd]              # (Bt, N, hd) bf16
            kh = qkv_b[:, :, C + h * hd:C + (h + 1) * hd]
            vh = qkv_b[:, :, 2 * C + h * hd:2 * C + (h + 1) * hd]
            s = jnp.einsum('bqd,bkd->bqk', qh, kh,
                           preferred_element_type=jnp.float32)  # (Bt, N, N) f32
            s = s - jnp.max(s, axis=-1, keepdims=True)
            e = jnp.exp(s)
            p = e * pl.reciprocal(jnp.sum(e, axis=-1, keepdims=True), approx=True)
            head_outs.append(
                jnp.einsum('bqk,bkd->bqd', p.astype(jnp.bfloat16), vh,
                           preferred_element_type=jnp.float32))  # (Bt, N, hd)

        o_attn = jnp.concatenate(head_outs, axis=-1).reshape(M, C)   # (M, C) f32
        proj = jnp.dot(o_attn.astype(jnp.bfloat16), wproj_ref[i],
                       preferred_element_type=jnp.float32)           # (M, C)
        ys.append(x2 + proj + bproj_ref[i])                          # residual

    # ---- MLP on the implicit concat [y1|y2|y3]; LN over 3C via split statistics ----
    inv_3c = 1.0 / (3.0 * C)
    row_sum = (jnp.sum(ys[0], axis=-1, keepdims=True)
               + jnp.sum(ys[1], axis=-1, keepdims=True)
               + jnp.sum(ys[2], axis=-1, keepdims=True))
    mean = row_sum * inv_3c
    d = [y - mean for y in ys]
    var = (jnp.sum(d[0] * d[0], axis=-1, keepdims=True)
           + jnp.sum(d[1] * d[1], axis=-1, keepdims=True)
           + jnp.sum(d[2] * d[2], axis=-1, keepdims=True)) * inv_3c
    rstd = jax.lax.rsqrt(var + 1e-5)

    hidden = None
    for j in range(3):
        zn = (d[j] * rstd * ln2_g_ref[j] + ln2_b_ref[j]).astype(jnp.bfloat16)
        part = jnp.dot(zn, w1_ref[j], preferred_element_type=jnp.float32)  # (M, Hm)
        hidden = part if hidden is None else hidden + part
    hidden = hidden + b1_ref[...]
    # exact GELU (nn.GELU default): 0.5*x*(1+erf(x/sqrt(2)))
    hidden = 0.5 * hidden * (1.0 + jax.lax.erf(hidden * inv_sqrt2))
    hidden_b = hidden.astype(jnp.bfloat16)

    for j in range(3):
        out = ys[j] + jnp.dot(hidden_b, w2_ref[j],
                              preferred_element_type=jnp.float32) + b2_ref[j]
        o_ref[j] = out.reshape(Bt, N, C).astype(o_ref.dtype)


# ----------------------------------------------------------------------------
# Wrapper: single pallas_call for the whole block
# ----------------------------------------------------------------------------
def shr_block(x_1, x_2, x_3, params, num_heads, batch_tile=None,
              vmem_limit_bytes=None):
    B, N, C = x_1.shape
    assert C % num_heads == 0
    Hm = params["b1"].shape[-1]
    hd = C // num_heads

    # Keep >= 2 grid steps when possible (v7x has 2 TensorCores); otherwise fold
    # everything into one step to minimize per-step overhead.
    if batch_tile is None:
        batch_tile = B // 2 if (B >= 2 and B % 2 == 0) else B
    Bt = batch_tile
    assert B % Bt == 0
    steps = B // Bt

    # one stacked input / output -> one DMA descriptor each per step
    x = jnp.stack([x_1, x_2, x_3], axis=0)                    # (3, B, N, C)

    x_spec = pl.BlockSpec((3, Bt, N, C), lambda b: (0, b, 0, 0))
    o_spec = pl.BlockSpec((3, Bt, N, C), lambda b: (0, b, 0, 0))
    c2 = lambda b: (0, 0)
    c3 = lambda b: (0, 0, 0)

    in_specs = [
        x_spec,
        pl.BlockSpec((3, 1, C), c3),          # ln1_g
        pl.BlockSpec((3, 1, C), c3),          # ln1_b
        pl.BlockSpec((3, C, 3 * C), c3),      # wqkv_t   (bf16, q cols pre-scaled)
        pl.BlockSpec((3, C, C), c3),          # wproj_t  (bf16)
        pl.BlockSpec((3, 1, C), c3),          # bproj
        pl.BlockSpec((3, 1, C), c3),          # ln2_g (split over the 3C concat)
        pl.BlockSpec((3, 1, C), c3),          # ln2_b (split)
        pl.BlockSpec((3, C, Hm), c3),         # w1_t  (row-split, bf16)
        pl.BlockSpec((1, Hm), c2),            # b1
        pl.BlockSpec((3, Hm, C), c3),         # w2_t  (col-split, bf16)
        pl.BlockSpec((3, 1, C), c3),          # b2    (split)
    ]

    # rough cost hint so XLA overlaps surrounding ops with the custom call
    flops = B * (3 * (2 * N * C * 3 * C
                      + 4 * num_heads * N * N * hd
                      + 2 * N * C * C)
                 + 12 * N * C * Hm)
    transcendentals = B * (3 * num_heads * N * N + N * Hm)
    bytes_accessed = (4 * 6 * B * N * C
                      + 2 * 3 * (C * 3 * C + C * C + C * Hm + Hm * C)
                      + 4 * (3 * 6 * C + Hm))

    cp_kwargs = dict(dimension_semantics=("parallel",))
    if vmem_limit_bytes is not None:
        cp_kwargs["vmem_limit_bytes"] = vmem_limit_bytes

    kern = partial(_shr_block_kernel, num_heads=num_heads)
    out = pl.pallas_call(
        kern,
        out_shape=jax.ShapeDtypeStruct((3, B, N, C), x_1.dtype),
        grid=(steps,),
        in_specs=in_specs,
        out_specs=o_spec,
        compiler_params=pltpu.CompilerParams(**cp_kwargs),
        cost_estimate=pl.CostEstimate(flops=flops,
                                      transcendentals=transcendentals,
                                      bytes_accessed=bytes_accessed),
    )(x,
      params["ln1_g"], params["ln1_b"], params["wqkv_t"],
      params["wproj_t"], params["bproj"],
      params["ln2_g"], params["ln2_b"],
      params["w1_t"], params["b1"], params["w2_t"], params["b2"])
    return out[0], out[1], out[2]


# ----------------------------------------------------------------------------
# Deterministic synthetic parameters (shapes match the PyTorch module; branch
# weights pre-stacked, MLP weights pre-split, matmul weights pre-cast to bf16,
# and the 1/sqrt(head_dim) qk scale folded into the q columns of wqkv_t).
# ----------------------------------------------------------------------------
def init_params(key, dim, mlp_hidden_dim, num_heads):
    d3 = dim * 3
    keys = jax.random.split(key, 8)

    def normal(k, shape):
        return (0.02 * jax.random.normal(k, shape)).astype(jnp.float32)

    wqkv = normal(keys[0], (3, dim, d3))          # [in, out=(q|k|v)], qkv_bias=False
    scale = (dim // num_heads) ** (-0.5)
    wqkv = wqkv.at[:, :, :dim].multiply(scale)    # fold qk scale into q columns

    return {
        # per-branch attention params, stacked on a leading axis of size 3
        "ln1_g": jnp.ones((3, 1, dim), jnp.float32),
        "ln1_b": jnp.zeros((3, 1, dim), jnp.float32),
        "wqkv_t": wqkv.astype(jnp.bfloat16),
        "wproj_t": normal(keys[1], (3, dim, dim)).astype(jnp.bfloat16),   # [in, out]
        "bproj": normal(keys[2], (3, 1, dim)),
        # MLP over the concatenated 3*dim features, stored channel-chunk-split
        "ln2_g": jnp.ones((3, 1, dim), jnp.float32),
        "ln2_b": jnp.zeros((3, 1, dim), jnp.float32),
        "w1_t": normal(keys[3], (3, dim, mlp_hidden_dim)).astype(jnp.bfloat16),
        "b1": normal(keys[4], (1, mlp_hidden_dim)),
        "w2_t": normal(keys[5], (3, mlp_hidden_dim, dim)).astype(jnp.bfloat16),
        "b2": normal(keys[6], (3, 1, dim)),
    }


if __name__ == "__main__":
    B, N, C = 2, 8, 32          # batch, tokens (joints), channels
    NUM_HEADS = 4               # head_dim = 8
    MLP_HIDDEN = 64

    key = jax.random.PRNGKey(0)
    k_p, k1, k2, k3 = jax.random.split(key, 4)
    params = init_params(k_p, C, MLP_HIDDEN, NUM_HEADS)

    x_1 = jax.random.normal(k1, (B, N, C), dtype=jnp.float32)
    x_2 = jax.random.normal(k2, (B, N, C), dtype=jnp.float32)
    x_3 = jax.random.normal(k3, (B, N, C), dtype=jnp.float32)

    y_1, y_2, y_3 = shr_block(x_1, x_2, x_3, params, NUM_HEADS)
    jax.block_until_ready((y_1, y_2, y_3))

    assert y_1.shape == (B, N, C) and y_2.shape == (B, N, C) and y_3.shape == (B, N, C)
    assert all(bool(jnp.all(jnp.isfinite(y))) for y in (y_1, y_2, y_3))
    print("KERNEL_OK")
</pallas_src>

<mosaic_0001>
module attributes {stable_mosaic.version = 11 : i64} {
  func.func @_shr_block_kernel(%arg0: i32, %arg1: memref<3x1x8x32xf32, #tpu.memory_space<vmem>>, %arg2: memref<3x1x32xf32, #tpu.memory_space<vmem>>, %arg3: memref<3x1x32xf32, #tpu.memory_space<vmem>>, %arg4: memref<3x32x96xbf16, #tpu.memory_space<vmem>>, %arg5: memref<3x32x32xbf16, #tpu.memory_space<vmem>>, %arg6: memref<3x1x32xf32, #tpu.memory_space<vmem>>, %arg7: memref<3x1x32xf32, #tpu.memory_space<vmem>>, %arg8: memref<3x1x32xf32, #tpu.memory_space<vmem>>, %arg9: memref<3x32x64xbf16, #tpu.memory_space<vmem>>, %arg10: memref<1x64xf32, #tpu.memory_space<vmem>>, %arg11: memref<3x64x32xbf16, #tpu.memory_space<vmem>>, %arg12: memref<3x1x32xf32, #tpu.memory_space<vmem>>, %arg13: memref<3x1x8x32xf32, #tpu.memory_space<vmem>>) attributes {dimension_semantics = [#tpu.dimension_semantics<parallel>], iteration_bounds = array<i64: 2>, scalar_prefetch = 0 : i64, scratch_operands = 0 : i64, tpu.core_type = #tpu.core_type<tc>, window_params = [{transform_indices = @transform_0, window_bounds = array<i64: 3, 1, 8, 32>}, {pipeline_mode = #tpu.pipeline_mode<synchronous>, transform_indices = @transform_1, window_bounds = array<i64: 3, 1, 32>}, {pipeline_mode = #tpu.pipeline_mode<synchronous>, transform_indices = @transform_2, window_bounds = array<i64: 3, 1, 32>}, {pipeline_mode = #tpu.pipeline_mode<synchronous>, transform_indices = @transform_3, window_bounds = array<i64: 3, 32, 96>}, {pipeline_mode = #tpu.pipeline_mode<synchronous>, transform_indices = @transform_4, window_bounds = array<i64: 3, 32, 32>}, {pipeline_mode = #tpu.pipeline_mode<synchronous>, transform_indices = @transform_5, window_bounds = array<i64: 3, 1, 32>}, {pipeline_mode = #tpu.pipeline_mode<synchronous>, transform_indices = @transform_6, window_bounds = array<i64: 3, 1, 32>}, {pipeline_mode = #tpu.pipeline_mode<synchronous>, transform_indices = @transform_7, window_bounds = array<i64: 3, 1, 32>}, {pipeline_mode = #tpu.pipeline_mode<synchronous>, transform_indices = @transform_8, window_bounds = array<i64: 3, 32, 64>}, {pipeline_mode = #tpu.pipeline_mode<synchronous>, transform_indices = @transform_9, window_bounds = array<i64: 1, 64>}, {pipeline_mode = #tpu.pipeline_mode<synchronous>, transform_indices = @transform_10, window_bounds = array<i64: 3, 64, 32>}, {pipeline_mode = #tpu.pipeline_mode<synchronous>, transform_indices = @transform_11, window_bounds = array<i64: 3, 1, 32>}, {transform_indices = @transform_12, window_bounds = array<i64: 3, 1, 8, 32>}]} {
    %c0 = arith.constant 0 : index
    %c0_0 = arith.constant 0 : index
    %c0_1 = arith.constant 0 : index
    %c0_2 = arith.constant 0 : index
    %0 = vector.load %arg1[%c0, %c0_0, %c0_1, %c0_2] : memref<3x1x8x32xf32, #tpu.memory_space<vmem>>, vector<1x1x8x32xf32>
    %1 = vector.shape_cast %0 : vector<1x1x8x32xf32> to vector<1x8x32xf32>
    %2 = vector.shape_cast %1 : vector<1x8x32xf32> to vector<8x32xf32>
    %c0_3 = arith.constant 0 : index
    %c0_4 = arith.constant 0 : index
    %c0_5 = arith.constant 0 : index
    %3 = vector.load %arg2[%c0_3, %c0_4, %c0_5] : memref<3x1x32xf32, #tpu.memory_space<vmem>>, vector<1x1x32xf32>
    %4 = vector.shape_cast %3 : vector<1x1x32xf32> to vector<1x32xf32>
    %c0_6 = arith.constant 0 : index
    %c0_7 = arith.constant 0 : index
    %c0_8 = arith.constant 0 : index
    %5 = vector.load %arg3[%c0_6, %c0_7, %c0_8] : memref<3x1x32xf32, #tpu.memory_space<vmem>>, vector<1x1x32xf32>
    %6 = vector.shape_cast %5 : vector<1x1x32xf32> to vector<1x32xf32>
    %cst = arith.constant dense<0.000000e+00> : vector<8xf32>
    %7 = vector.multi_reduction <add>, %2, %cst [1] : vector<8x32xf32> to vector<8xf32>
    %8 = vector.shape_cast %7 : vector<8xf32> to vector<8x1xf32>
    %cst_9 = arith.constant 3.200000e+01 : f32
    %9 = vector.broadcast %cst_9 : f32 to vector<8x1xf32>
    %10 = arith.divf %8, %9 : vector<8x1xf32>
    %11 = vector.broadcast %10 : vector<8x1xf32> to vector<8x32xf32>
    %12 = arith.subf %2, %11 : vector<8x32xf32>
    %13 = arith.mulf %12, %12 : vector<8x32xf32>
    %cst_10 = arith.constant dense<0.000000e+00> : vector<8xf32>
    %14 = vector.multi_reduction <add>, %13, %cst_10 [1] : vector<8x32xf32> to vector<8xf32>
    %15 = vector.shape_cast %14 : vector<8xf32> to vector<8x1xf32>
    %cst_11 = arith.constant 3.200000e+01 : f32
    %16 = vector.broadcast %cst_11 : f32 to vector<8x1xf32>
    %17 = arith.divf %15, %16 : vector<8x1xf32>
    %18 = vector.broadcast %10 : vector<8x1xf32> to vector<8x32xf32>
    %19 = arith.subf %2, %18 : vector<8x32xf32>
    %cst_12 = arith.constant 9.99999974E-6 : f32
    %20 = vector.broadcast %cst_12 : f32 to vector<8x1xf32>
    %21 = arith.addf %17, %20 : vector<8x1xf32>
    %22 = math.rsqrt %21 : vector<8x1xf32>
    %23 = vector.broadcast %22 : vector<8x1xf32> to vector<8x32xf32>
    %24 = arith.mulf %19, %23 : vector<8x32xf32>
    %25 = vector.broadcast %4 : vector<1x32xf32> to vector<8x32xf32>
    %26 = arith.mulf %24, %25 : vector<8x32xf32>
    %27 = vector.broadcast %6 : vector<1x32xf32> to vector<8x32xf32>
    %28 = arith.addf %26, %27 : vector<8x32xf32>
    %29 = arith.truncf %28 : vector<8x32xf32> to vector<8x32xbf16>
    %c0_13 = arith.constant 0 : index
    %c0_14 = arith.constant 0 : index
    %c0_15 = arith.constant 0 : index
    %30 = vector.load %arg4[%c0_13, %c0_14, %c0_15] : memref<3x32x96xbf16, #tpu.memory_space<vmem>>, vector<1x32x96xbf16>
    %31 = vector.shape_cast %30 : vector<1x32x96xbf16> to vector<32x96xbf16>
    %cst_16 = arith.constant dense<0.000000e+00> : vector<8x96xf32>
    %32 = tpu.matmul %29, %31, %cst_16 {dimension_numbers = #tpu.dot_dimension_numbers<[1], [0], [0], [1], [0, 0, 1, 1], [], []>} : vector<8x32xbf16>, vector<32x96xbf16>, vector<8x96xf32> -> vector<8x96xf32>
    %33 = arith.truncf %32 : vector<8x96xf32> to vector<8x96xbf16>
    %34 = vector.shape_cast %33 : vector<8x96xbf16> to vector<1x8x96xbf16>
    %35 = vector.extract_strided_slice %34 {offsets = [0, 0, 0], sizes = [1, 8, 8], strides = [1, 1, 1]} : vector<1x8x96xbf16> to vector<1x8x8xbf16>
    %36 = vector.extract_strided_slice %34 {offsets = [0, 0, 32], sizes = [1, 8, 8], strides = [1, 1, 1]} : vector<1x8x96xbf16> to vector<1x8x8xbf16>
    %37 = vector.extract_strided_slice %34 {offsets = [0, 0, 64], sizes = [1, 8, 8], strides = [1, 1, 1]} : vector<1x8x96xbf16> to vector<1x8x8xbf16>
    "tpu.trace_start"() <{level = 10 : i32, message = "bqd,bkd->bqk"}> : () -> ()
    %cst_17 = arith.constant dense<0.000000e+00> : vector<1x8x8xf32>
    %38 = tpu.matmul %35, %36, %cst_17 {dimension_numbers = #tpu.dot_dimension_numbers<[2], [2], [1], [1], [0, 0, 0, 1, 1, 1], [0], [0]>} : vector<1x8x8xbf16>, vector<1x8x8xbf16>, vector<1x8x8xf32> -> vector<1x8x8xf32>
    "tpu.trace_stop"() : () -> ()
    %cst_18 = arith.constant dense<0xFF800000> : vector<1x8xf32>
    %39 = vector.multi_reduction <maximumf>, %38, %cst_18 [2] : vector<1x8x8xf32> to vector<1x8xf32>
    %40 = vector.shape_cast %39 : vector<1x8xf32> to vector<1x8x1xf32>
    %41 = vector.broadcast %40 : vector<1x8x1xf32> to vector<1x8x8xf32>
    %42 = arith.subf %38, %41 : vector<1x8x8xf32>
    %43 = math.exp %42 : vector<1x8x8xf32>
    %cst_19 = arith.constant dense<0.000000e+00> : vector<1x8xf32>
    %44 = vector.multi_reduction <add>, %43, %cst_19 [2] : vector<1x8x8xf32> to vector<1x8xf32>
    %45 = vector.shape_cast %44 : vector<1x8xf32> to vector<1x8x1xf32>
    %46 = tpu.reciprocal %45 {approx = true} : vector<1x8x1xf32> -> vector<1x8x1xf32>
    %47 = vector.broadcast %46 : vector<1x8x1xf32> to vector<1x8x8xf32>
    %48 = arith.mulf %43, %47 : vector<1x8x8xf32>
    %49 = arith.truncf %48 : vector<1x8x8xf32> to vector<1x8x8xbf16>
    "tpu.trace_start"() <{level = 10 : i32, message = "bqk,bkd->bqd"}> : () -> ()
    %cst_20 = arith.constant dense<0.000000e+00> : vector<1x8x8xf32>
    %50 = tpu.matmul %49, %37, %cst_20 {dimension_numbers = #tpu.dot_dimension_numbers<[2], [1], [1], [2], [0, 0, 0, 1, 1, 2], [0], [0]>} : vector<1x8x8xbf16>, vector<1x8x8xbf16>, vector<1x8x8xf32> -> vector<1x8x8xf32>
    "tpu.trace_stop"() : () -> ()
    %51 = vector.extract_strided_slice %34 {offsets = [0, 0, 8], sizes = [1, 8, 8], strides = [1, 1, 1]} : vector<1x8x96xbf16> to vector<1x8x8xbf16>
    %52 = vector.extract_strided_slice %34 {offsets = [0, 0, 40], sizes = [1, 8, 8], strides = [1, 1, 1]} : vector<1x8x96xbf16> to vector<1x8x8xbf16>
    %53 = vector.extract_strided_slice %34 {offsets = [0, 0, 72], sizes = [1, 8, 8], strides = [1, 1, 1]} : vector<1x8x96xbf16> to vector<1x8x8xbf16>
    "tpu.trace_start"() <{level = 10 : i32, message = "bqd,bkd->bqk"}> : () -> ()
    %cst_21 = arith.constant dense<0.000000e+00> : vector<1x8x8xf32>
    %54 = tpu.matmul %51, %52, %cst_21 {dimension_numbers = #tpu.dot_dimension_numbers<[2], [2], [1], [1], [0, 0, 0, 1, 1, 1], [0], [0]>} : vector<1x8x8xbf16>, vector<1x8x8xbf16>, vector<1x8x8xf32> -> vector<1x8x8xf32>
    "tpu.trace_stop"() : () -> ()
    %cst_22 = arith.constant dense<0xFF800000> : vector<1x8xf32>
    %55 = vector.multi_reduction <maximumf>, %54, %cst_22 [2] : vector<1x8x8xf32> to vector<1x8xf32>
    %56 = vector.shape_cast %55 : vector<1x8xf32> to vector<1x8x1xf32>
    %57 = vector.broadcast %56 : vector<1x8x1xf32> to vector<1x8x8xf32>
    %58 = arith.subf %54, %57 : vector<1x8x8xf32>
    %59 = math.exp %58 : vector<1x8x8xf32>
    %cst_23 = arith.constant dense<0.000000e+00> : vector<1x8xf32>
    %60 = vector.multi_reduction <add>, %59, %cst_23 [2] : vector<1x8x8xf32> to vector<1x8xf32>
    %61 = vector.shape_cast %60 : vector<1x8xf32> to vector<1x8x1xf32>
    %62 = tpu.reciprocal %61 {approx = true} : vector<1x8x1xf32> -> vector<1x8x1xf32>
    %63 = vector.broadcast %62 : vector<1x8x1xf32> to vector<1x8x8xf32>
    %64 = arith.mulf %59, %63 : vector<1x8x8xf32>
    %65 = arith.truncf %64 : vector<1x8x8xf32> to vector<1x8x8xbf16>
    "tpu.trace_start"() <{level = 10 : i32, message = "bqk,bkd->bqd"}> : () -> ()
    %cst_24 = arith.constant dense<0.000000e+00> : vector<1x8x8xf32>
    %66 = tpu.matmul %65, %53, %cst_24 {dimension_numbers = #tpu.dot_dimension_numbers<[2], [1], [1], [2], [0, 0, 0, 1, 1, 2], [0], [0]>} : vector<1x8x8xbf16>, vector<1x8x8xbf16>, vector<1x8x8xf32> -> vector<1x8x8xf32>
    "tpu.trace_stop"() : () -> ()
    %67 = vector.extract_strided_slice %34 {offsets = [0, 0, 16], sizes = [1, 8, 8], strides = [1, 1, 1]} : vector<1x8x96xbf16> to vector<1x8x8xbf16>
    %68 = vector.extract_strided_slice %34 {offsets = [0, 0, 48], sizes = [1, 8, 8], strides = [1, 1, 1]} : vector<1x8x96xbf16> to vector<1x8x8xbf16>
    %69 = vector.extract_strided_slice %34 {offsets = [0, 0, 80], sizes = [1, 8, 8], strides = [1, 1, 1]} : vector<1x8x96xbf16> to vector<1x8x8xbf16>
    "tpu.trace_start"() <{level = 10 : i32, message = "bqd,bkd->bqk"}> : () -> ()
    %cst_25 = arith.constant dense<0.000000e+00> : vector<1x8x8xf32>
    %70 = tpu.matmul %67, %68, %cst_25 {dimension_numbers = #tpu.dot_dimension_numbers<[2], [2], [1], [1], [0, 0, 0, 1, 1, 1], [0], [0]>} : vector<1x8x8xbf16>, vector<1x8x8xbf16>, vector<1x8x8xf32> -> vector<1x8x8xf32>
    "tpu.trace_stop"() : () -> ()
    %cst_26 = arith.constant dense<0xFF800000> : vector<1x8xf32>
    %71 = vector.multi_reduction <maximumf>, %70, %cst_26 [2] : vector<1x8x8xf32> to vector<1x8xf32>
    %72 = vector.shape_cast %71 : vector<1x8xf32> to vector<1x8x1xf32>
    %73 = vector.broadcast %72 : vector<1x8x1xf32> to vector<1x8x8xf32>
    %74 = arith.subf %70, %73 : vector<1x8x8xf32>
    %75 = math.exp %74 : vector<1x8x8xf32>
    %cst_27 = arith.constant dense<0.000000e+00> : vector<1x8xf32>
    %76 = vector.multi_reduction <add>, %75, %cst_27 [2] : vector<1x8x8xf32> to vector<1x8xf32>
    %77 = vector.shape_cast %76 : vector<1x8xf32> to vector<1x8x1xf32>
    %78 = tpu.reciprocal %77 {approx = true} : vector<1x8x1xf32> -> vector<1x8x1xf32>
    %79 = vector.broadcast %78 : vector<1x8x1xf32> to vector<1x8x8xf32>
    %80 = arith.mulf %75, %79 : vector<1x8x8xf32>
    %81 = arith.truncf %80 : vector<1x8x8xf32> to vector<1x8x8xbf16>
    "tpu.trace_start"() <{level = 10 : i32, message = "bqk,bkd->bqd"}> : () -> ()
    %cst_28 = arith.constant dense<0.000000e+00> : vector<1x8x8xf32>
    %82 = tpu.matmul %81, %69, %cst_28 {dimension_numbers = #tpu.dot_dimension_numbers<[2], [1], [1], [2], [0, 0, 0, 1, 1, 2], [0], [0]>} : vector<1x8x8xbf16>, vector<1x8x8xbf16>, vector<1x8x8xf32> -> vector<1x8x8xf32>
    "tpu.trace_stop"() : () -> ()
    %83 = vector.extract_strided_slice %34 {offsets = [0, 0, 24], sizes = [1, 8, 8], strides = [1, 1, 1]} : vector<1x8x96xbf16> to vector<1x8x8xbf16>
    %84 = vector.extract_strided_slice %34 {offsets = [0, 0, 56], sizes = [1, 8, 8], strides = [1, 1, 1]} : vector<1x8x96xbf16> to vector<1x8x8xbf16>
    %85 = vector.extract_strided_slice %34 {offsets = [0, 0, 88], sizes = [1, 8, 8], strides = [1, 1, 1]} : vector<1x8x96xbf16> to vector<1x8x8xbf16>
    "tpu.trace_start"() <{level = 10 : i32, message = "bqd,bkd->bqk"}> : () -> ()
    %cst_29 = arith.constant dense<0.000000e+00> : vector<1x8x8xf32>
    %86 = tpu.matmul %83, %84, %cst_29 {dimension_numbers = #tpu.dot_dimension_numbers<[2], [2], [1], [1], [0, 0, 0, 1, 1, 1], [0], [0]>} : vector<1x8x8xbf16>, vector<1x8x8xbf16>, vector<1x8x8xf32> -> vector<1x8x8xf32>
    "tpu.trace_stop"() : () -> ()
    %cst_30 = arith.constant dense<0xFF800000> : vector<1x8xf32>
    %87 = vector.multi_reduction <maximumf>, %86, %cst_30 [2] : vector<1x8x8xf32> to vector<1x8xf32>
    %88 = vector.shape_cast %87 : vector<1x8xf32> to vector<1x8x1xf32>
    %89 = vector.broadcast %88 : vector<1x8x1xf32> to vector<1x8x8xf32>
    %90 = arith.subf %86, %89 : vector<1x8x8xf32>
    %91 = math.exp %90 : vector<1x8x8xf32>
    %cst_31 = arith.constant dense<0.000000e+00> : vector<1x8xf32>
    %92 = vector.multi_reduction <add>, %91, %cst_31 [2] : vector<1x8x8xf32> to vector<1x8xf32>
    %93 = vector.shape_cast %92 : vector<1x8xf32> to vector<1x8x1xf32>
    %94 = tpu.reciprocal %93 {approx = true} : vector<1x8x1xf32> -> vector<1x8x1xf32>
    %95 = vector.broadcast %94 : vector<1x8x1xf32> to vector<1x8x8xf32>
    %96 = arith.mulf %91, %95 : vector<1x8x8xf32>
    %97 = arith.truncf %96 : vector<1x8x8xf32> to vector<1x8x8xbf16>
    "tpu.trace_start"() <{level = 10 : i32, message = "bqk,bkd->bqd"}> : () -> ()
    %cst_32 = arith.constant dense<0.000000e+00> : vector<1x8x8xf32>
    %98 = tpu.matmul %97, %85, %cst_32 {dimension_numbers = #tpu.dot_dimension_numbers<[2], [1], [1], [2], [0, 0, 0, 1, 1, 2], [0], [0]>} : vector<1x8x8xbf16>, vector<1x8x8xbf16>, vector<1x8x8xf32> -> vector<1x8x8xf32>
    "tpu.trace_stop"() : () -> ()
    %99 = tpu.concatenate %50, %66, %82, %98 in 2 : vector<1x8x8xf32>, vector<1x8x8xf32>, vector<1x8x8xf32>, vector<1x8x8xf32> -> vector<1x8x32xf32>
    %100 = vector.shape_cast %99 : vector<1x8x32xf32> to vector<8x32xf32>
    %101 = arith.truncf %100 : vector<8x32xf32> to vector<8x32xbf16>
    %c0_33 = arith.constant 0 : index
    %c0_34 = arith.constant 0 : index
    %c0_35 = arith.constant 0 : index
    %102 = vector.load %arg5[%c0_33, %c0_34, %c0_35] : memref<3x32x32xbf16, #tpu.memory_space<vmem>>, vector<1x32x32xbf16>
    %103 = vector.shape_cast %102 : vector<1x32x32xbf16> to vector<32x32xbf16>
    %cst_36 = arith.constant dense<0.000000e+00> : vector<8x32xf32>
    %104 = tpu.matmul %101, %103, %cst_36 {dimension_numbers = #tpu.dot_dimension_numbers<[1], [0], [0], [1], [0, 0, 1, 1], [], []>} : vector<8x32xbf16>, vector<32x32xbf16>, vector<8x32xf32> -> vector<8x32xf32>
    %105 = arith.addf %2, %104 : vector<8x32xf32>
    %c0_37 = arith.constant 0 : index
    %c0_38 = arith.constant 0 : index
    %c0_39 = arith.constant 0 : index
    %106 = vector.load %arg6[%c0_37, %c0_38, %c0_39] : memref<3x1x32xf32, #tpu.memory_space<vmem>>, vector<1x1x32xf32>
    %107 = vector.shape_cast %106 : vector<1x1x32xf32> to vector<1x32xf32>
    %108 = vector.broadcast %107 : vector<1x32xf32> to vector<8x32xf32>
    %109 = arith.addf %105, %108 : vector<8x32xf32>
    %c1 = arith.constant 1 : index
    %c0_40 = arith.constant 0 : index
    %c0_41 = arith.constant 0 : index
    %c0_42 = arith.constant 0 : index
    %110 = vector.load %arg1[%c1, %c0_40, %c0_41, %c0_42] : memref<3x1x8x32xf32, #tpu.memory_space<vmem>>, vector<1x1x8x32xf32>
    %111 = vector.shape_cast %110 : vector<1x1x8x32xf32> to vector<1x8x32xf32>
    %112 = vector.shape_cast %111 : vector<1x8x32xf32> to vector<8x32xf32>
    %c1_43 = arith.constant 1 : index
    %c0_44 = arith.constant 0 : index
    %c0_45 = arith.constant 0 : index
    %113 = vector.load %arg2[%c1_43, %c0_44, %c0_45] : memref<3x1x32xf32, #tpu.memory_space<vmem>>, vector<1x1x32xf32>
    %114 = vector.shape_cast %113 : vector<1x1x32xf32> to vector<1x32xf32>
    %c1_46 = arith.constant 1 : index
    %c0_47 = arith.constant 0 : index
    %c0_48 = arith.constant 0 : index
    %115 = vector.load %arg3[%c1_46, %c0_47, %c0_48] : memref<3x1x32xf32, #tpu.memory_space<vmem>>, vector<1x1x32xf32>
    %116 = vector.shape_cast %115 : vector<1x1x32xf32> to vector<1x32xf32>
    %cst_49 = arith.constant dense<0.000000e+00> : vector<8xf32>
    %117 = vector.multi_reduction <add>, %112, %cst_49 [1] : vector<8x32xf32> to vector<8xf32>
    %118 = vector.shape_cast %117 : vector<8xf32> to vector<8x1xf32>
    %cst_50 = arith.constant 3.200000e+01 : f32
    %119 = vector.broadcast %cst_50 : f32 to vector<8x1xf32>
    %120 = arith.divf %118, %119 : vector<8x1xf32>
    %121 = vector.broadcast %120 : vector<8x1xf32> to vector<8x32xf32>
    %122 = arith.subf %112, %121 : vector<8x32xf32>
    %123 = arith.mulf %122, %122 : vector<8x32xf32>
    %cst_51 = arith.constant dense<0.000000e+00> : vector<8xf32>
    %124 = vector.multi_reduction <add>, %123, %cst_51 [1] : vector<8x32xf32> to vector<8xf32>
    %125 = vector.shape_cast %124 : vector<8xf32> to vector<8x1xf32>
    %cst_52 = arith.constant 3.200000e+01 : f32
    %126 = vector.broadcast %cst_52 : f32 to vector<8x1xf32>
    %127 = arith.divf %125, %126 : vector<8x1xf32>
    %128 = vector.broadcast %120 : vector<8x1xf32> to vector<8x32xf32>
    %129 = arith.subf %112, %128 : vector<8x32xf32>
    %cst_53 = arith.constant 9.99999974E-6 : f32
    %130 = vector.broadcast %cst_53 : f32 to vector<8x1xf32>
    %131 = arith.addf %127, %130 : vector<8x1xf32>
    %132 = math.rsqrt %131 : vector<8x1xf32>
    %133 = vector.broadcast %132 : vector<8x1xf32> to vector<8x32xf32>
    %134 = arith.mulf %129, %133 : vector<8x32xf32>
    %135 = vector.broadcast %114 : vector<1x32xf32> to vector<8x32xf32>
    %136 = arith.mulf %134, %135 : vector<8x32xf32>
    %137 = vector.broadcast %116 : vector<1x32xf32> to vector<8x32xf32>
    %138 = arith.addf %136, %137 : vector<8x32xf32>
    %139 = arith.truncf %138 : vector<8x32xf32> to vector<8x32xbf16>
    %c1_54 = arith.constant 1 : index
    %c0_55 = arith.constant 0 : index
    %c0_56 = arith.constant 0 : index
    %140 = vector.load %arg4[%c1_54, %c0_55, %c0_56] : memref<3x32x96xbf16, #tpu.memory_space<vmem>>, vector<1x32x96xbf16>
    %141 = vector.shape_cast %140 : vector<1x32x96xbf16> to vector<32x96xbf16>
    %cst_57 = arith.constant dense<0.000000e+00> : vector<8x96xf32>
    %142 = tpu.matmul %139, %141, %cst_57 {dimension_numbers = #tpu.dot_dimension_numbers<[1], [0], [0], [1], [0, 0, 1, 1], [], []>} : vector<8x32xbf16>, vector<32x96xbf16>, vector<8x96xf32> -> vector<8x96xf32>
    %143 = arith.truncf %142 : vector<8x96xf32> to vector<8x96xbf16>
    %144 = vector.shape_cast %143 : vector<8x96xbf16> to vector<1x8x96xbf16>
    %145 = vector.extract_strided_slice %144 {offsets = [0, 0, 0], sizes = [1, 8, 8], strides = [1, 1, 1]} : vector<1x8x96xbf16> to vector<1x8x8xbf16>
    %146 = vector.extract_strided_slice %144 {offsets = [0, 0, 32], sizes = [1, 8, 8], strides = [1, 1, 1]} : vector<1x8x96xbf16> to vector<1x8x8xbf16>
    %147 = vector.extract_strided_slice %144 {offsets = [0, 0, 64], sizes = [1, 8, 8], strides = [1, 1, 1]} : vector<1x8x96xbf16> to vector<1x8x8xbf16>
    "tpu.trace_start"() <{level = 10 : i32, message = "bqd,bkd->bqk"}> : () -> ()
    %cst_58 = arith.constant dense<0.000000e+00> : vector<1x8x8xf32>
    %148 = tpu.matmul %145, %146, %cst_58 {dimension_numbers = #tpu.dot_dimension_numbers<[2], [2], [1], [1], [0, 0, 0, 1, 1, 1], [0], [0]>} : vector<1x8x8xbf16>, vector<1x8x8xbf16>, vector<1x8x8xf32> -> vector<1x8x8xf32>
    "tpu.trace_stop"() : () -> ()
    %cst_59 = arith.constant dense<0xFF800000> : vector<1x8xf32>
    %149 = vector.multi_reduction <maximumf>, %148, %cst_59 [2] : vector<1x8x8xf32> to vector<1x8xf32>
    %150 = vector.shape_cast %149 : vector<1x8xf32> to vector<1x8x1xf32>
    %151 = vector.broadcast %150 : vector<1x8x1xf32> to vector<1x8x8xf32>
    %152 = arith.subf %148, %151 : vector<1x8x8xf32>
    %153 = math.exp %152 : vector<1x8x8xf32>
    %cst_60 = arith.constant dense<0.000000e+00> : vector<1x8xf32>
    %154 = vector.multi_reduction <add>, %153, %cst_60 [2] : vector<1x8x8xf32> to vector<1x8xf32>
    %155 = vector.shape_cast %154 : vector<1x8xf32> to vector<1x8x1xf32>
    %156 = tpu.reciprocal %155 {approx = true} : vector<1x8x1xf32> -> vector<1x8x1xf32>
    %157 = vector.broadcast %156 : vector<1x8x1xf32> to vector<1x8x8xf32>
    %158 = arith.mulf %153, %157 : vector<1x8x8xf32>
    %159 = arith.truncf %158 : vector<1x8x8xf32> to vector<1x8x8xbf16>
    "tpu.trace_start"() <{level = 10 : i32, message = "bqk,bkd->bqd"}> : () -> ()
    %cst_61 = arith.constant dense<0.000000e+00> : vector<1x8x8xf32>
    %160 = tpu.matmul %159, %147, %cst_61 {dimension_numbers = #tpu.dot_dimension_numbers<[2], [1], [1], [2], [0, 0, 0, 1, 1, 2], [0], [0]>} : vector<1x8x8xbf16>, vector<1x8x8xbf16>, vector<1x8x8xf32> -> vector<1x8x8xf32>
    "tpu.trace_stop"() : () -> ()
    %161 = vector.extract_strided_slice %144 {offsets = [0, 0, 8], sizes = [1, 8, 8], strides = [1, 1, 1]} : vector<1x8x96xbf16> to vector<1x8x8xbf16>
    %162 = vector.extract_strided_slice %144 {offsets = [0, 0, 40], sizes = [1, 8, 8], strides = [1, 1, 1]} : vector<1x8x96xbf16> to vector<1x8x8xbf16>
    %163 = vector.extract_strided_slice %144 {offsets = [0, 0, 72], sizes = [1, 8, 8], strides = [1, 1, 1]} : vector<1x8x96xbf16> to vector<1x8x8xbf16>
    "tpu.trace_start"() <{level = 10 : i32, message = "bqd,bkd->bqk"}> : () -> ()
    %cst_62 = arith.constant dense<0.000000e+00> : vector<1x8x8xf32>
    %164 = tpu.matmul %161, %162, %cst_62 {dimension_numbers = #tpu.dot_dimension_numbers<[2], [2], [1], [1], [0, 0, 0, 1, 1, 1], [0], [0]>} : vector<1x8x8xbf16>, vector<1x8x8xbf16>, vector<1x8x8xf32> -> vector<1x8x8xf32>
    "tpu.trace_stop"() : () -> ()
    %cst_63 = arith.constant dense<0xFF800000> : vector<1x8xf32>
    %165 = vector.multi_reduction <maximumf>, %164, %cst_63 [2] : vector<1x8x8xf32> to vector<1x8xf32>
    %166 = vector.shape_cast %165 : vector<1x8xf32> to vector<1x8x1xf32>
    %167 = vector.broadcast %166 : vector<1x8x1xf32> to vector<1x8x8xf32>
    %168 = arith.subf %164, %167 : vector<1x8x8xf32>
    %169 = math.exp %168 : vector<1x8x8xf32>
    %cst_64 = arith.constant dense<0.000000e+00> : vector<1x8xf32>
    %170 = vector.multi_reduction <add>, %169, %cst_64 [2] : vector<1x8x8xf32> to vector<1x8xf32>
    %171 = vector.shape_cast %170 : vector<1x8xf32> to vector<1x8x1xf32>
    %172 = tpu.reciprocal %171 {approx = true} : vector<1x8x1xf32> -> vector<1x8x1xf32>
    %173 = vector.broadcast %172 : vector<1x8x1xf32> to vector<1x8x8xf32>
    %174 = arith.mulf %169, %173 : vector<1x8x8xf32>
    %175 = arith.truncf %174 : vector<1x8x8xf32> to vector<1x8x8xbf16>
    "tpu.trace_start"() <{level = 10 : i32, message = "bqk,bkd->bqd"}> : () -> ()
    %cst_65 = arith.constant dense<0.000000e+00> : vector<1x8x8xf32>
    %176 = tpu.matmul %175, %163, %cst_65 {dimension_numbers = #tpu.dot_dimension_numbers<[2], [1], [1], [2], [0, 0, 0, 1, 1, 2], [0], [0]>} : vector<1x8x8xbf16>, vector<1x8x8xbf16>, vector<1x8x8xf32> -> vector<1x8x8xf32>
    "tpu.trace_stop"() : () -> ()
    %177 = vector.extract_strided_slice %144 {offsets = [0, 0, 16], sizes = [1, 8, 8], strides = [1, 1, 1]} : vector<1x8x96xbf16> to vector<1x8x8xbf16>
    %178 = vector.extract_strided_slice %144 {offsets = [0, 0, 48], sizes = [1, 8, 8], strides = [1, 1, 1]} : vector<1x8x96xbf16> to vector<1x8x8xbf16>
    %179 = vector.extract_strided_slice %144 {offsets = [0, 0, 80], sizes = [1, 8, 8], strides = [1, 1, 1]} : vector<1x8x96xbf16> to vector<1x8x8xbf16>
    "tpu.trace_start"() <{level = 10 : i32, message = "bqd,bkd->bqk"}> : () -> ()
    %cst_66 = arith.constant dense<0.000000e+00> : vector<1x8x8xf32>
    %180 = tpu.matmul %177, %178, %cst_66 {dimension_numbers = #tpu.dot_dimension_numbers<[2], [2], [1], [1], [0, 0, 0, 1, 1, 1], [0], [0]>} : vector<1x8x8xbf16>, vector<1x8x8xbf16>, vector<1x8x8xf32> -> vector<1x8x8xf32>
    "tpu.trace_stop"() : () -> ()
    %cst_67 = arith.constant dense<0xFF800000> : vector<1x8xf32>
    %181 = vector.multi_reduction <maximumf>, %180, %cst_67 [2] : vector<1x8x8xf32> to vector<1x8xf32>
    %182 = vector.shape_cast %181 : vector<1x8xf32> to vector<1x8x1xf32>
    %183 = vector.broadcast %182 : vector<1x8x1xf32> to vector<1x8x8xf32>
    %184 = arith.subf %180, %183 : vector<1x8x8xf32>
    %185 = math.exp %184 : vector<1x8x8xf32>
    %cst_68 = arith.constant dense<0.000000e+00> : vector<1x8xf32>
    %186 = vector.multi_reduction <add>, %185, %cst_68 [2] : vector<1x8x8xf32> to vector<1x8xf32>
    %187 = vector.shape_cast %186 : vector<1x8xf32> to vector<1x8x1xf32>
    %188 = tpu.reciprocal %187 {approx = true} : vector<1x8x1xf32> -> vector<1x8x1xf32>
    %189 = vector.broadcast %188 : vector<1x8x1xf32> to vector<1x8x8xf32>
    %190 = arith.mulf %185, %189 : vector<1x8x8xf32>
    %191 = arith.truncf %190 : vector<1x8x8xf32> to vector<1x8x8xbf16>
    "tpu.trace_start"() <{level = 10 : i32, message = "bqk,bkd->bqd"}> : () -> ()
    %cst_69 = arith.constant dense<0.000000e+00> : vector<1x8x8xf32>
    %192 = tpu.matmul %191, %179, %cst_69 {dimension_numbers = #tpu.dot_dimension_numbers<[2], [1], [1], [2], [0, 0, 0, 1, 1, 2], [0], [0]>} : vector<1x8x8xbf16>, vector<1x8x8xbf16>, vector<1x8x8xf32> -> vector<1x8x8xf32>
    "tpu.trace_stop"() : () -> ()
    %193 = vector.extract_strided_slice %144 {offsets = [0, 0, 24], sizes = [1, 8, 8], strides = [1, 1, 1]} : vector<1x8x96xbf16> to vector<1x8x8xbf16>
    %194 = vector.extract_strided_slice %144 {offsets = [0, 0, 56], sizes = [1, 8, 8], strides = [1, 1, 1]} : vector<1x8x96xbf16> to vector<1x8x8xbf16>
    %195 = vector.extract_strided_slice %144 {offsets = [0, 0, 88], sizes = [1, 8, 8], strides = [1, 1, 1]} : vector<1x8x96xbf16> to vector<1x8x8xbf16>
    "tpu.trace_start"() <{level = 10 : i32, message = "bqd,bkd->bqk"}> : () -> ()
    %cst_70 = arith.constant dense<0.000000e+00> : vector<1x8x8xf32>
    %196 = tpu.matmul %193, %194, %cst_70 {dimension_numbers = #tpu.dot_dimension_numbers<[2], [2], [1], [1], [0, 0, 0, 1, 1, 1], [0], [0]>} : vector<1x8x8xbf16>, vector<1x8x8xbf16>, vector<1x8x8xf32> -> vector<1x8x8xf32>
    "tpu.trace_stop"() : () -> ()
    %cst_71 = arith.constant dense<0xFF800000> : vector<1x8xf32>
    %197 = vector.multi_reduction <maximumf>, %196, %cst_71 [2] : vector<1x8x8xf32> to vector<1x8xf32>
    %198 = vector.shape_cast %197 : vector<1x8xf32> to vector<1x8x1xf32>
    %199 = vector.broadcast %198 : vector<1x8x1xf32> to vector<1x8x8xf32>
    %200 = arith.subf %196, %199 : vector<1x8x8xf32>
    %201 = math.exp %200 : vector<1x8x8xf32>
    %cst_72 = arith.constant dense<0.000000e+00> : vector<1x8xf32>
    %202 = vector.multi_reduction <add>, %201, %cst_72 [2] : vector<1x8x8xf32> to vector<1x8xf32>
    %203 = vector.shape_cast %202 : vector<1x8xf32> to vector<1x8x1xf32>
    %204 = tpu.reciprocal %203 {approx = true} : vector<1x8x1xf32> -> vector<1x8x1xf32>
    %205 = vector.broadcast %204 : vector<1x8x1xf32> to vector<1x8x8xf32>
    %206 = arith.mulf %201, %205 : vector<1x8x8xf32>
    %207 = arith.truncf %206 : vector<1x8x8xf32> to vector<1x8x8xbf16>
    "tpu.trace_start"() <{level = 10 : i32, message = "bqk,bkd->bqd"}> : () -> ()
    %cst_73 = arith.constant dense<0.000000e+00> : vector<1x8x8xf32>
    %208 = tpu.matmul %207, %195, %cst_73 {dimension_numbers = #tpu.dot_dimension_numbers<[2], [1], [1], [2], [0, 0, 0, 1, 1, 2], [0], [0]>} : vector<1x8x8xbf16>, vector<1x8x8xbf16>, vector<1x8x8xf32> -> vector<1x8x8xf32>
    "tpu.trace_stop"() : () -> ()
    %209 = tpu.concatenate %160, %176, %192, %208 in 2 : vector<1x8x8xf32>, vector<1x8x8xf32>, vector<1x8x8xf32>, vector<1x8x8xf32> -> vector<1x8x32xf32>
    %210 = vector.shape_cast %209 : vector<1x8x32xf32> to vector<8x32xf32>
    %211 = arith.truncf %210 : vector<8x32xf32> to vector<8x32xbf16>
    %c1_74 = arith.constant 1 : index
    %c0_75 = arith.constant 0 : index
    %c0_76 = arith.constant 0 : index
    %212 = vector.load %arg5[%c1_74, %c0_75, %c0_76] : memref<3x32x32xbf16, #tpu.memory_space<vmem>>, vector<1x32x32xbf16>
    %213 = vector.shape_cast %212 : vector<1x32x32xbf16> to vector<32x32xbf16>
    %cst_77 = arith.constant dense<0.000000e+00> : vector<8x32xf32>
    %214 = tpu.matmul %211, %213, %cst_77 {dimension_numbers = #tpu.dot_dimension_numbers<[1], [0], [0], [1], [0, 0, 1, 1], [], []>} : vector<8x32xbf16>, vector<32x32xbf16>, vector<8x32xf32> -> vector<8x32xf32>
    %215 = arith.addf %112, %214 : vector<8x32xf32>
    %c1_78 = arith.constant 1 : index
    %c0_79 = arith.constant 0 : index
    %c0_80 = arith.constant 0 : index
    %216 = vector.load %arg6[%c1_78, %c0_79, %c0_80] : memref<3x1x32xf32, #tpu.memory_space<vmem>>, vector<1x1x32xf32>
    %217 = vector.shape_cast %216 : vector<1x1x32xf32> to vector<1x32xf32>
    %218 = vector.broadcast %217 : vector<1x32xf32> to vector<8x32xf32>
    %219 = arith.addf %215, %218 : vector<8x32xf32>
    %c2 = arith.constant 2 : index
    %c0_81 = arith.constant 0 : index
    %c0_82 = arith.constant 0 : index
    %c0_83 = arith.constant 0 : index
    %220 = vector.load %arg1[%c2, %c0_81, %c0_82, %c0_83] : memref<3x1x8x32xf32, #tpu.memory_space<vmem>>, vector<1x1x8x32xf32>
    %221 = vector.shape_cast %220 : vector<1x1x8x32xf32> to vector<1x8x32xf32>
    %222 = vector.shape_cast %221 : vector<1x8x32xf32> to vector<8x32xf32>
    %c2_84 = arith.constant 2 : index
    %c0_85 = arith.constant 0 : index
    %c0_86 = arith.constant 0 : index
    %223 = vector.load %arg2[%c2_84, %c0_85, %c0_86] : memref<3x1x32xf32, #tpu.memory_space<vmem>>, vector<1x1x32xf32>
    %224 = vector.shape_cast %223 : vector<1x1x32xf32> to vector<1x32xf32>
    %c2_87 = arith.constant 2 : index
    %c0_88 = arith.constant 0 : index
    %c0_89 = arith.constant 0 : index
    %225 = vector.load %arg3[%c2_87, %c0_88, %c0_89] : memref<3x1x32xf32, #tpu.memory_space<vmem>>, vector<1x1x32xf32>
    %226 = vector.shape_cast %225 : vector<1x1x32xf32> to vector<1x32xf32>
    %cst_90 = arith.constant dense<0.000000e+00> : vector<8xf32>
    %227 = vector.multi_reduction <add>, %222, %cst_90 [1] : vector<8x32xf32> to vector<8xf32>
    %228 = vector.shape_cast %227 : vector<8xf32> to vector<8x1xf32>
    %cst_91 = arith.constant 3.200000e+01 : f32
    %229 = vector.broadcast %cst_91 : f32 to vector<8x1xf32>
    %230 = arith.divf %228, %229 : vector<8x1xf32>
    %231 = vector.broadcast %230 : vector<8x1xf32> to vector<8x32xf32>
    %232 = arith.subf %222, %231 : vector<8x32xf32>
    %233 = arith.mulf %232, %232 : vector<8x32xf32>
    %cst_92 = arith.constant dense<0.000000e+00> : vector<8xf32>
    %234 = vector.multi_reduction <add>, %233, %cst_92 [1] : vector<8x32xf32> to vector<8xf32>
    %235 = vector.shape_cast %234 : vector<8xf32> to vector<8x1xf32>
    %cst_93 = arith.constant 3.200000e+01 : f32
    %236 = vector.broadcast %cst_93 : f32 to vector<8x1xf32>
    %237 = arith.divf %235, %236 : vector<8x1xf32>
    %238 = vector.broadcast %230 : vector<8x1xf32> to vector<8x32xf32>
    %239 = arith.subf %222, %238 : vector<8x32xf32>
    %cst_94 = arith.constant 9.99999974E-6 : f32
    %240 = vector.broadcast %cst_94 : f32 to vector<8x1xf32>
    %241 = arith.addf %237, %240 : vector<8x1xf32>
    %242 = math.rsqrt %241 : vector<8x1xf32>
    %243 = vector.broadcast %242 : vector<8x1xf32> to vector<8x32xf32>
    %244 = arith.mulf %239, %243 : vector<8x32xf32>
    %245 = vector.broadcast %224 : vector<1x32xf32> to vector<8x32xf32>
    %246 = arith.mulf %244, %245 : vector<8x32xf32>
    %247 = vector.broadcast %226 : vector<1x32xf32> to vector<8x32xf32>
    %248 = arith.addf %246, %247 : vector<8x32xf32>
    %249 = arith.truncf %248 : vector<8x32xf32> to vector<8x32xbf16>
    %c2_95 = arith.constant 2 : index
    %c0_96 = arith.constant 0 : index
    %c0_97 = arith.constant 0 : index
    %250 = vector.load %arg4[%c2_95, %c0_96, %c0_97] : memref<3x32x96xbf16, #tpu.memory_space<vmem>>, vector<1x32x96xbf16>
    %251 = vector.shape_cast %250 : vector<1x32x96xbf16> to vector<32x96xbf16>
    %cst_98 = arith.constant dense<0.000000e+00> : vector<8x96xf32>
    %252 = tpu.matmul %249, %251, %cst_98 {dimension_numbers = #tpu.dot_dimension_numbers<[1], [0], [0], [1], [0, 0, 1, 1], [], []>} : vector<8x32xbf16>, vector<32x96xbf16>, vector<8x96xf32> -> vector<8x96xf32>
    %253 = arith.truncf %252 : vector<8x96xf32> to vector<8x96xbf16>
    %254 = vector.shape_cast %253 : vector<8x96xbf16> to vector<1x8x96xbf16>
    %255 = vector.extract_strided_slice %254 {offsets = [0, 0, 0], sizes = [1, 8, 8], strides = [1, 1, 1]} : vector<1x8x96xbf16> to vector<1x8x8xbf16>
    %256 = vector.extract_strided_slice %254 {offsets = [0, 0, 32], sizes = [1, 8, 8], strides = [1, 1, 1]} : vector<1x8x96xbf16> to vector<1x8x8xbf16>
    %257 = vector.extract_strided_slice %254 {offsets = [0, 0, 64], sizes = [1, 8, 8], strides = [1, 1, 1]} : vector<1x8x96xbf16> to vector<1x8x8xbf16>
    "tpu.trace_start"() <{level = 10 : i32, message = "bqd,bkd->bqk"}> : () -> ()
    %cst_99 = arith.constant dense<0.000000e+00> : vector<1x8x8xf32>
    %258 = tpu.matmul %255, %256, %cst_99 {dimension_numbers = #tpu.dot_dimension_numbers<[2], [2], [1], [1], [0, 0, 0, 1, 1, 1], [0], [0]>} : vector<1x8x8xbf16>, vector<1x8x8xbf16>, vector<1x8x8xf32> -> vector<1x8x8xf32>
    "tpu.trace_stop"() : () -> ()
    %cst_100 = arith.constant dense<0xFF800000> : vector<1x8xf32>
    %259 = vector.multi_reduction <maximumf>, %258, %cst_100 [2] : vector<1x8x8xf32> to vector<1x8xf32>
    %260 = vector.shape_cast %259 : vector<1x8xf32> to vector<1x8x1xf32>
    %261 = vector.broadcast %260 : vector<1x8x1xf32> to vector<1x8x8xf32>
    %262 = arith.subf %258, %261 : vector<1x8x8xf32>
    %263 = math.exp %262 : vector<1x8x8xf32>
    %cst_101 = arith.constant dense<0.000000e+00> : vector<1x8xf32>
    %264 = vector.multi_reduction <add>, %263, %cst_101 [2] : vector<1x8x8xf32> to vector<1x8xf32>
    %265 = vector.shape_cast %264 : vector<1x8xf32> to vector<1x8x1xf32>
    %266 = tpu.reciprocal %265 {approx = true} : vector<1x8x1xf32> -> vector<1x8x1xf32>
    %267 = vector.broadcast %266 : vector<1x8x1xf32> to vector<1x8x8xf32>
    %268 = arith.mulf %263, %267 : vector<1x8x8xf32>
    %269 = arith.truncf %268 : vector<1x8x8xf32> to vector<1x8x8xbf16>
    "tpu.trace_start"() <{level = 10 : i32, message = "bqk,bkd->bqd"}> : () -> ()
    %cst_102 = arith.constant dense<0.000000e+00> : vector<1x8x8xf32>
    %270 = tpu.matmul %269, %257, %cst_102 {dimension_numbers = #tpu.dot_dimension_numbers<[2], [1], [1], [2], [0, 0, 0, 1, 1, 2], [0], [0]>} : vector<1x8x8xbf16>, vector<1x8x8xbf16>, vector<1x8x8xf32> -> vector<1x8x8xf32>
    "tpu.trace_stop"() : () -> ()
    %271 = vector.extract_strided_slice %254 {offsets = [0, 0, 8], sizes = [1, 8, 8], strides = [1, 1, 1]} : vector<1x8x96xbf16> to vector<1x8x8xbf16>
    %272 = vector.extract_strided_slice %254 {offsets = [0, 0, 40], sizes = [1, 8, 8], strides = [1, 1, 1]} : vector<1x8x96xbf16> to vector<1x8x8xbf16>
    %273 = vector.extract_strided_slice %254 {offsets = [0, 0, 72], sizes = [1, 8, 8], strides = [1, 1, 1]} : vector<1x8x96xbf16> to vector<1x8x8xbf16>
    "tpu.trace_start"() <{level = 10 : i32, message = "bqd,bkd->bqk"}> : () -> ()
    %cst_103 = arith.constant dense<0.000000e+00> : vector<1x8x8xf32>
    %274 = tpu.matmul %271, %272, %cst_103 {dimension_numbers = #tpu.dot_dimension_numbers<[2], [2], [1], [1], [0, 0, 0, 1, 1, 1], [0], [0]>} : vector<1x8x8xbf16>, vector<1x8x8xbf16>, vector<1x8x8xf32> -> vector<1x8x8xf32>
    "tpu.trace_stop"() : () -> ()
    %cst_104 = arith.constant dense<0xFF800000> : vector<1x8xf32>
    %275 = vector.multi_reduction <maximumf>, %274, %cst_104 [2] : vector<1x8x8xf32> to vector<1x8xf32>
    %276 = vector.shape_cast %275 : vector<1x8xf32> to vector<1x8x1xf32>
    %277 = vector.broadcast %276 : vector<1x8x1xf32> to vector<1x8x8xf32>
    %278 = arith.subf %274, %277 : vector<1x8x8xf32>
    %279 = math.exp %278 : vector<1x8x8xf32>
    %cst_105 = arith.constant dense<0.000000e+00> : vector<1x8xf32>
    %280 = vector.multi_reduction <add>, %279, %cst_105 [2] : vector<1x8x8xf32> to vector<1x8xf32>
    %281 = vector.shape_cast %280 : vector<1x8xf32> to vector<1x8x1xf32>
    %282 = tpu.reciprocal %281 {approx = true} : vector<1x8x1xf32> -> vector<1x8x1xf32>
    %283 = vector.broadcast %282 : vector<1x8x1xf32> to vector<1x8x8xf32>
    %284 = arith.mulf %279, %283 : vector<1x8x8xf32>
    %285 = arith.truncf %284 : vector<1x8x8xf32> to vector<1x8x8xbf16>
    "tpu.trace_start"() <{level = 10 : i32, message = "bqk,bkd->bqd"}> : () -> ()
    %cst_106 = arith.constant dense<0.000000e+00> : vector<1x8x8xf32>
    %286 = tpu.matmul %285, %273, %cst_106 {dimension_numbers = #tpu.dot_dimension_numbers<[2], [1], [1], [2], [0, 0, 0, 1, 1, 2], [0], [0]>} : vector<1x8x8xbf16>, vector<1x8x8xbf16>, vector<1x8x8xf32> -> vector<1x8x8xf32>
    "tpu.trace_stop"() : () -> ()
    %287 = vector.extract_strided_slice %254 {offsets = [0, 0, 16], sizes = [1, 8, 8], strides = [1, 1, 1]} : vector<1x8x96xbf16> to vector<1x8x8xbf16>
    %288 = vector.extract_strided_slice %254 {offsets = [0, 0, 48], sizes = [1, 8, 8], strides = [1, 1, 1]} : vector<1x8x96xbf16> to vector<1x8x8xbf16>
    %289 = vector.extract_strided_slice %254 {offsets = [0, 0, 80], sizes = [1, 8, 8], strides = [1, 1, 1]} : vector<1x8x96xbf16> to vector<1x8x8xbf16>
    "tpu.trace_start"() <{level = 10 : i32, message = "bqd,bkd->bqk"}> : () -> ()
    %cst_107 = arith.constant dense<0.000000e+00> : vector<1x8x8xf32>
    %290 = tpu.matmul %287, %288, %cst_107 {dimension_numbers = #tpu.dot_dimension_numbers<[2], [2], [1], [1], [0, 0, 0, 1, 1, 1], [0], [0]>} : vector<1x8x8xbf16>, vector<1x8x8xbf16>, vector<1x8x8xf32> -> vector<1x8x8xf32>
    "tpu.trace_stop"() : () -> ()
    %cst_108 = arith.constant dense<0xFF800000> : vector<1x8xf32>
    %291 = vector.multi_reduction <maximumf>, %290, %cst_108 [2] : vector<1x8x8xf32> to vector<1x8xf32>
    %292 = vector.shape_cast %291 : vector<1x8xf32> to vector<1x8x1xf32>
    %293 = vector.broadcast %292 : vector<1x8x1xf32> to vector<1x8x8xf32>
    %294 = arith.subf %290, %293 : vector<1x8x8xf32>
    %295 = math.exp %294 : vector<1x8x8xf32>
    %cst_109 = arith.constant dense<0.000000e+00> : vector<1x8xf32>
    %296 = vector.multi_reduction <add>, %295, %cst_109 [2] : vector<1x8x8xf32> to vector<1x8xf32>
    %297 = vector.shape_cast %296 : vector<1x8xf32> to vector<1x8x1xf32>
    %298 = tpu.reciprocal %297 {approx = true} : vector<1x8x1xf32> -> vector<1x8x1xf32>
    %299 = vector.broadcast %298 : vector<1x8x1xf32> to vector<1x8x8xf32>
    %300 = arith.mulf %295, %299 : vector<1x8x8xf32>
    %301 = arith.truncf %300 : vector<1x8x8xf32> to vector<1x8x8xbf16>
    "tpu.trace_start"() <{level = 10 : i32, message = "bqk,bkd->bqd"}> : () -> ()
    %cst_110 = arith.constant dense<0.000000e+00> : vector<1x8x8xf32>
    %302 = tpu.matmul %301, %289, %cst_110 {dimension_numbers = #tpu.dot_dimension_numbers<[2], [1], [1], [2], [0, 0, 0, 1, 1, 2], [0], [0]>} : vector<1x8x8xbf16>, vector<1x8x8xbf16>, vector<1x8x8xf32> -> vector<1x8x8xf32>
    "tpu.trace_stop"() : () -> ()
    %303 = vector.extract_strided_slice %254 {offsets = [0, 0, 24], sizes = [1, 8, 8], strides = [1, 1, 1]} : vector<1x8x96xbf16> to vector<1x8x8xbf16>
    %304 = vector.extract_strided_slice %254 {offsets = [0, 0, 56], sizes = [1, 8, 8], strides = [1, 1, 1]} : vector<1x8x96xbf16> to vector<1x8x8xbf16>
    %305 = vector.extract_strided_slice %254 {offsets = [0, 0, 88], sizes = [1, 8, 8], strides = [1, 1, 1]} : vector<1x8x96xbf16> to vector<1x8x8xbf16>
    "tpu.trace_start"() <{level = 10 : i32, message = "bqd,bkd->bqk"}> : () -> ()
    %cst_111 = arith.constant dense<0.000000e+00> : vector<1x8x8xf32>
    %306 = tpu.matmul %303, %304, %cst_111 {dimension_numbers = #tpu.dot_dimension_numbers<[2], [2], [1], [1], [0, 0, 0, 1, 1, 1], [0], [0]>} : vector<1x8x8xbf16>, vector<1x8x8xbf16>, vector<1x8x8xf32> -> vector<1x8x8xf32>
    "tpu.trace_stop"() : () -> ()
    %cst_112 = arith.constant dense<0xFF800000> : vector<1x8xf32>
    %307 = vector.multi_reduction <maximumf>, %306, %cst_112 [2] : vector<1x8x8xf32> to vector<1x8xf32>
    %308 = vector.shape_cast %307 : vector<1x8xf32> to vector<1x8x1xf32>
    %309 = vector.broadcast %308 : vector<1x8x1xf32> to vector<1x8x8xf32>
    %310 = arith.subf %306, %309 : vector<1x8x8xf32>
    %311 = math.exp %310 : vector<1x8x8xf32>
    %cst_113 = arith.constant dense<0.000000e+00> : vector<1x8xf32>
    %312 = vector.multi_reduction <add>, %311, %cst_113 [2] : vector<1x8x8xf32> to vector<1x8xf32>
    %313 = vector.shape_cast %312 : vector<1x8xf32> to vector<1x8x1xf32>
    %314 = tpu.reciprocal %313 {approx = true} : vector<1x8x1xf32> -> vector<1x8x1xf32>
    %315 = vector.broadcast %314 : vector<1x8x1xf32> to vector<1x8x8xf32>
    %316 = arith.mulf %311, %315 : vector<1x8x8xf32>
    %317 = arith.truncf %316 : vector<1x8x8xf32> to vector<1x8x8xbf16>
    "tpu.trace_start"() <{level = 10 : i32, message = "bqk,bkd->bqd"}> : () -> ()
    %cst_114 = arith.constant dense<0.000000e+00> : vector<1x8x8xf32>
    %318 = tpu.matmul %317, %305, %cst_114 {dimension_numbers = #tpu.dot_dimension_numbers<[2], [1], [1], [2], [0, 0, 0, 1, 1, 2], [0], [0]>} : vector<1x8x8xbf16>, vector<1x8x8xbf16>, vector<1x8x8xf32> -> vector<1x8x8xf32>
    "tpu.trace_stop"() : () -> ()
    %319 = tpu.concatenate %270, %286, %302, %318 in 2 : vector<1x8x8xf32>, vector<1x8x8xf32>, vector<1x8x8xf32>, vector<1x8x8xf32> -> vector<1x8x32xf32>
    %320 = vector.shape_cast %319 : vector<1x8x32xf32> to vector<8x32xf32>
    %321 = arith.truncf %320 : vector<8x32xf32> to vector<8x32xbf16>
    %c2_115 = arith.constant 2 : index
    %c0_116 = arith.constant 0 : index
    %c0_117 = arith.constant 0 : index
    %322 = vector.load %arg5[%c2_115, %c0_116, %c0_117] : memref<3x32x32xbf16, #tpu.memory_space<vmem>>, vector<1x32x32xbf16>
    %323 = vector.shape_cast %322 : vector<1x32x32xbf16> to vector<32x32xbf16>
    %cst_118 = arith.constant dense<0.000000e+00> : vector<8x32xf32>
    %324 = tpu.matmul %321, %323, %cst_118 {dimension_numbers = #tpu.dot_dimension_numbers<[1], [0], [0], [1], [0, 0, 1, 1], [], []>} : vector<8x32xbf16>, vector<32x32xbf16>, vector<8x32xf32> -> vector<8x32xf32>
    %325 = arith.addf %222, %324 : vector<8x32xf32>
    %c2_119 = arith.constant 2 : index
    %c0_120 = arith.constant 0 : index
    %c0_121 = arith.constant 0 : index
    %326 = vector.load %arg6[%c2_119, %c0_120, %c0_121] : memref<3x1x32xf32, #tpu.memory_space<vmem>>, vector<1x1x32xf32>
    %327 = vector.shape_cast %326 : vector<1x1x32xf32> to vector<1x32xf32>
    %328 = vector.broadcast %327 : vector<1x32xf32> to vector<8x32xf32>
    %329 = arith.addf %325, %328 : vector<8x32xf32>
    %cst_122 = arith.constant dense<0.000000e+00> : vector<8xf32>
    %330 = vector.multi_reduction <add>, %109, %cst_122 [1] : vector<8x32xf32> to vector<8xf32>
    %331 = vector.shape_cast %330 : vector<8xf32> to vector<8x1xf32>
    %cst_123 = arith.constant dense<0.000000e+00> : vector<8xf32>
    %332 = vector.multi_reduction <add>, %219, %cst_123 [1] : vector<8x32xf32> to vector<8xf32>
    %333 = vector.shape_cast %332 : vector<8xf32> to vector<8x1xf32>
    %334 = arith.addf %331, %333 : vector<8x1xf32>
    %cst_124 = arith.constant dense<0.000000e+00> : vector<8xf32>
    %335 = vector.multi_reduction <add>, %329, %cst_124 [1] : vector<8x32xf32> to vector<8xf32>
    %336 = vector.shape_cast %335 : vector<8xf32> to vector<8x1xf32>
    %337 = arith.addf %334, %336 : vector<8x1xf32>
    %cst_125 = arith.constant 0.010416667 : f32
    %338 = vector.broadcast %cst_125 : f32 to vector<8x1xf32>
    %339 = arith.mulf %337, %338 : vector<8x1xf32>
    %340 = vector.broadcast %339 : vector<8x1xf32> to vector<8x32xf32>
    %341 = arith.subf %109, %340 : vector<8x32xf32>
    %342 = vector.broadcast %339 : vector<8x1xf32> to vector<8x32xf32>
    %343 = arith.subf %219, %342 : vector<8x32xf32>
    %344 = vector.broadcast %339 : vector<8x1xf32> to vector<8x32xf32>
    %345 = arith.subf %329, %344 : vector<8x32xf32>
    %346 = arith.mulf %341, %341 : vector<8x32xf32>
    %cst_126 = arith.constant dense<0.000000e+00> : vector<8xf32>
    %347 = vector.multi_reduction <add>, %346, %cst_126 [1] : vector<8x32xf32> to vector<8xf32>
    %348 = vector.shape_cast %347 : vector<8xf32> to vector<8x1xf32>
    %349 = arith.mulf %343, %343 : vector<8x32xf32>
    %cst_127 = arith.constant dense<0.000000e+00> : vector<8xf32>
    %350 = vector.multi_reduction <add>, %349, %cst_127 [1] : vector<8x32xf32> to vector<8xf32>
    %351 = vector.shape_cast %350 : vector<8xf32> to vector<8x1xf32>
    %352 = arith.addf %348, %351 : vector<8x1xf32>
    %353 = arith.mulf %345, %345 : vector<8x32xf32>
    %cst_128 = arith.constant dense<0.000000e+00> : vector<8xf32>
    %354 = vector.multi_reduction <add>, %353, %cst_128 [1] : vector<8x32xf32> to vector<8xf32>
    %355 = vector.shape_cast %354 : vector<8xf32> to vector<8x1xf32>
    %356 = arith.addf %352, %355 : vector<8x1xf32>
    %cst_129 = arith.constant 0.010416667 : f32
    %357 = vector.broadcast %cst_129 : f32 to vector<8x1xf32>
    %358 = arith.mulf %356, %357 : vector<8x1xf32>
    %cst_130 = arith.constant 9.99999974E-6 : f32
    %359 = vector.broadcast %cst_130 : f32 to vector<8x1xf32>
    %360 = arith.addf %358, %359 : vector<8x1xf32>
    %361 = math.rsqrt %360 : vector<8x1xf32>
    %362 = vector.broadcast %361 : vector<8x1xf32> to vector<8x32xf32>
    %363 = arith.mulf %341, %362 : vector<8x32xf32>
    %c0_131 = arith.constant 0 : index
    %c0_132 = arith.constant 0 : index
    %c0_133 = arith.constant 0 : index
    %364 = vector.load %arg7[%c0_131, %c0_132, %c0_133] : memref<3x1x32xf32, #tpu.memory_space<vmem>>, vector<1x1x32xf32>
    %365 = vector.shape_cast %364 : vector<1x1x32xf32> to vector<1x32xf32>
    %366 = vector.broadcast %365 : vector<1x32xf32> to vector<8x32xf32>
    %367 = arith.mulf %363, %366 : vector<8x32xf32>
    %c0_134 = arith.constant 0 : index
    %c0_135 = arith.constant 0 : index
    %c0_136 = arith.constant 0 : index
    %368 = vector.load %arg8[%c0_134, %c0_135, %c0_136] : memref<3x1x32xf32, #tpu.memory_space<vmem>>, vector<1x1x32xf32>
    %369 = vector.shape_cast %368 : vector<1x1x32xf32> to vector<1x32xf32>
    %370 = vector.broadcast %369 : vector<1x32xf32> to vector<8x32xf32>
    %371 = arith.addf %367, %370 : vector<8x32xf32>
    %372 = arith.truncf %371 : vector<8x32xf32> to vector<8x32xbf16>
    %c0_137 = arith.constant 0 : index
    %c0_138 = arith.constant 0 : index
    %c0_139 = arith.constant 0 : index
    %373 = vector.load %arg9[%c0_137, %c0_138, %c0_139] : memref<3x32x64xbf16, #tpu.memory_space<vmem>>, vector<1x32x64xbf16>
    %374 = vector.shape_cast %373 : vector<1x32x64xbf16> to vector<32x64xbf16>
    %cst_140 = arith.constant dense<0.000000e+00> : vector<8x64xf32>
    %375 = tpu.matmul %372, %374, %cst_140 {dimension_numbers = #tpu.dot_dimension_numbers<[1], [0], [0], [1], [0, 0, 1, 1], [], []>} : vector<8x32xbf16>, vector<32x64xbf16>, vector<8x64xf32> -> vector<8x64xf32>
    %376 = vector.broadcast %361 : vector<8x1xf32> to vector<8x32xf32>
    %377 = arith.mulf %343, %376 : vector<8x32xf32>
    %c1_141 = arith.constant 1 : index
    %c0_142 = arith.constant 0 : index
    %c0_143 = arith.constant 0 : index
    %378 = vector.load %arg7[%c1_141, %c0_142, %c0_143] : memref<3x1x32xf32, #tpu.memory_space<vmem>>, vector<1x1x32xf32>
    %379 = vector.shape_cast %378 : vector<1x1x32xf32> to vector<1x32xf32>
    %380 = vector.broadcast %379 : vector<1x32xf32> to vector<8x32xf32>
    %381 = arith.mulf %377, %380 : vector<8x32xf32>
    %c1_144 = arith.constant 1 : index
    %c0_145 = arith.constant 0 : index
    %c0_146 = arith.constant 0 : index
    %382 = vector.load %arg8[%c1_144, %c0_145, %c0_146] : memref<3x1x32xf32, #tpu.memory_space<vmem>>, vector<1x1x32xf32>
    %383 = vector.shape_cast %382 : vector<1x1x32xf32> to vector<1x32xf32>
    %384 = vector.broadcast %383 : vector<1x32xf32> to vector<8x32xf32>
    %385 = arith.addf %381, %384 : vector<8x32xf32>
    %386 = arith.truncf %385 : vector<8x32xf32> to vector<8x32xbf16>
    %c1_147 = arith.constant 1 : index
    %c0_148 = arith.constant 0 : index
    %c0_149 = arith.constant 0 : index
    %387 = vector.load %arg9[%c1_147, %c0_148, %c0_149] : memref<3x32x64xbf16, #tpu.memory_space<vmem>>, vector<1x32x64xbf16>
    %388 = vector.shape_cast %387 : vector<1x32x64xbf16> to vector<32x64xbf16>
    %cst_150 = arith.constant dense<0.000000e+00> : vector<8x64xf32>
    %389 = tpu.matmul %386, %388, %cst_150 {dimension_numbers = #tpu.dot_dimension_numbers<[1], [0], [0], [1], [0, 0, 1, 1], [], []>} : vector<8x32xbf16>, vector<32x64xbf16>, vector<8x64xf32> -> vector<8x64xf32>
    %390 = arith.addf %375, %389 : vector<8x64xf32>
    %391 = vector.broadcast %361 : vector<8x1xf32> to vector<8x32xf32>
    %392 = arith.mulf %345, %391 : vector<8x32xf32>
    %c2_151 = arith.constant 2 : index
    %c0_152 = arith.constant 0 : index
    %c0_153 = arith.constant 0 : index
    %393 = vector.load %arg7[%c2_151, %c0_152, %c0_153] : memref<3x1x32xf32, #tpu.memory_space<vmem>>, vector<1x1x32xf32>
    %394 = vector.shape_cast %393 : vector<1x1x32xf32> to vector<1x32xf32>
    %395 = vector.broadcast %394 : vector<1x32xf32> to vector<8x32xf32>
    %396 = arith.mulf %392, %395 : vector<8x32xf32>
    %c2_154 = arith.constant 2 : index
    %c0_155 = arith.constant 0 : index
    %c0_156 = arith.constant 0 : index
    %397 = vector.load %arg8[%c2_154, %c0_155, %c0_156] : memref<3x1x32xf32, #tpu.memory_space<vmem>>, vector<1x1x32xf32>
    %398 = vector.shape_cast %397 : vector<1x1x32xf32> to vector<1x32xf32>
    %399 = vector.broadcast %398 : vector<1x32xf32> to vector<8x32xf32>
    %400 = arith.addf %396, %399 : vector<8x32xf32>
    %401 = arith.truncf %400 : vector<8x32xf32> to vector<8x32xbf16>
    %c2_157 = arith.constant 2 : index
    %c0_158 = arith.constant 0 : index
    %c0_159 = arith.constant 0 : index
    %402 = vector.load %arg9[%c2_157, %c0_158, %c0_159] : memref<3x32x64xbf16, #tpu.memory_space<vmem>>, vector<1x32x64xbf16>
    %403 = vector.shape_cast %402 : vector<1x32x64xbf16> to vector<32x64xbf16>
    %cst_160 = arith.constant dense<0.000000e+00> : vector<8x64xf32>
    %404 = tpu.matmul %401, %403, %cst_160 {dimension_numbers = #tpu.dot_dimension_numbers<[1], [0], [0], [1], [0, 0, 1, 1], [], []>} : vector<8x32xbf16>, vector<32x64xbf16>, vector<8x64xf32> -> vector<8x64xf32>
    %405 = arith.addf %390, %404 : vector<8x64xf32>
    %c0_161 = arith.constant 0 : index
    %c0_162 = arith.constant 0 : index
    %406 = vector.load %arg10[%c0_161, %c0_162] : memref<1x64xf32, #tpu.memory_space<vmem>>, vector<1x64xf32>
    %407 = vector.broadcast %406 : vector<1x64xf32> to vector<8x64xf32>
    %408 = arith.addf %405, %407 : vector<8x64xf32>
    %cst_163 = arith.constant 5.000000e-01 : f32
    %409 = vector.broadcast %cst_163 : f32 to vector<8x64xf32>
    %410 = arith.mulf %409, %408 : vector<8x64xf32>
    %cst_164 = arith.constant 0.707106769 : f32
    %411 = vector.broadcast %cst_164 : f32 to vector<8x64xf32>
    %412 = arith.mulf %408, %411 : vector<8x64xf32>
    %413 = math.erf %412 : vector<8x64xf32>
    %cst_165 = arith.constant 1.000000e+00 : f32
    %414 = vector.broadcast %cst_165 : f32 to vector<8x64xf32>
    %415 = arith.addf %414, %413 : vector<8x64xf32>
    %416 = arith.mulf %410, %415 : vector<8x64xf32>
    %417 = arith.truncf %416 : vector<8x64xf32> to vector<8x64xbf16>
    %c0_166 = arith.constant 0 : index
    %c0_167 = arith.constant 0 : index
    %c0_168 = arith.constant 0 : index
    %418 = vector.load %arg11[%c0_166, %c0_167, %c0_168] : memref<3x64x32xbf16, #tpu.memory_space<vmem>>, vector<1x64x32xbf16>
    %419 = vector.shape_cast %418 : vector<1x64x32xbf16> to vector<64x32xbf16>
    %cst_169 = arith.constant dense<0.000000e+00> : vector<8x32xf32>
    %420 = tpu.matmul %417, %419, %cst_169 {dimension_numbers = #tpu.dot_dimension_numbers<[1], [0], [0], [1], [0, 0, 1, 1], [], []>} : vector<8x64xbf16>, vector<64x32xbf16>, vector<8x32xf32> -> vector<8x32xf32>
    %421 = arith.addf %109, %420 : vector<8x32xf32>
    %c0_170 = arith.constant 0 : index
    %c0_171 = arith.constant 0 : index
    %c0_172 = arith.constant 0 : index
    %422 = vector.load %arg12[%c0_170, %c0_171, %c0_172] : memref<3x1x32xf32, #tpu.memory_space<vmem>>, vector<1x1x32xf32>
    %423 = vector.shape_cast %422 : vector<1x1x32xf32> to vector<1x32xf32>
    %424 = vector.broadcast %423 : vector<1x32xf32> to vector<8x32xf32>
    %425 = arith.addf %421, %424 : vector<8x32xf32>
    %426 = vector.shape_cast %425 : vector<8x32xf32> to vector<1x8x32xf32>
    %c0_173 = arith.constant 0 : index
    %c0_174 = arith.constant 0 : index
    %c0_175 = arith.constant 0 : index
    %c0_176 = arith.constant 0 : index
    %427 = vector.load %arg13[%c0_173, %c0_174, %c0_175, %c0_176] : memref<3x1x8x32xf32, #tpu.memory_space<vmem>>, vector<1x1x8x32xf32>
    %428 = vector.shape_cast %427 : vector<1x1x8x32xf32> to vector<1x8x32xf32>
    %429 = vector.shape_cast %426 : vector<1x8x32xf32> to vector<1x1x8x32xf32>
    tpu.vector_store %arg13[%c0_173, %c0_174, %c0_175, %c0_176], %429 {strides = array<i32>} : memref<3x1x8x32xf32, #tpu.memory_space<vmem>>, vector<1x1x8x32xf32>,
    %c1_177 = arith.constant 1 : index
    %c0_178 = arith.constant 0 : index
    %c0_179 = arith.constant 0 : index
    %430 = vector.load %arg11[%c1_177, %c0_178, %c0_179] : memref<3x64x32xbf16, #tpu.memory_space<vmem>>, vector<1x64x32xbf16>
    %431 = vector.shape_cast %430 : vector<1x64x32xbf16> to vector<64x32xbf16>
    %cst_180 = arith.constant dense<0.000000e+00> : vector<8x32xf32>
    %432 = tpu.matmul %417, %431, %cst_180 {dimension_numbers = #tpu.dot_dimension_numbers<[1], [0], [0], [1], [0, 0, 1, 1], [], []>} : vector<8x64xbf16>, vector<64x32xbf16>, vector<8x32xf32> -> vector<8x32xf32>
    %433 = arith.addf %219, %432 : vector<8x32xf32>
    %c1_181 = arith.constant 1 : index
    %c0_182 = arith.constant 0 : index
    %c0_183 = arith.constant 0 : index
    %434 = vector.load %arg12[%c1_181, %c0_182, %c0_183] : memref<3x1x32xf32, #tpu.memory_space<vmem>>, vector<1x1x32xf32>
    %435 = vector.shape_cast %434 : vector<1x1x32xf32> to vector<1x32xf32>
    %436 = vector.broadcast %435 : vector<1x32xf32> to vector<8x32xf32>
    %437 = arith.addf %433, %436 : vector<8x32xf32>
    %438 = vector.shape_cast %437 : vector<8x32xf32> to vector<1x8x32xf32>
    %c1_184 = arith.constant 1 : index
    %c0_185 = arith.constant 0 : index
    %c0_186 = arith.constant 0 : index
    %c0_187 = arith.constant 0 : index
    %439 = vector.load %arg13[%c1_184, %c0_185, %c0_186, %c0_187] : memref<3x1x8x32xf32, #tpu.memory_space<vmem>>, vector<1x1x8x32xf32>
    %440 = vector.shape_cast %439 : vector<1x1x8x32xf32> to vector<1x8x32xf32>
    %441 = vector.shape_cast %438 : vector<1x8x32xf32> to vector<1x1x8x32xf32>
    tpu.vector_store %arg13[%c1_184, %c0_185, %c0_186, %c0_187], %441 {strides = array<i32>} : memref<3x1x8x32xf32, #tpu.memory_space<vmem>>, vector<1x1x8x32xf32>,
    %c2_188 = arith.constant 2 : index
    %c0_189 = arith.constant 0 : index
    %c0_190 = arith.constant 0 : index
    %442 = vector.load %arg11[%c2_188, %c0_189, %c0_190] : memref<3x64x32xbf16, #tpu.memory_space<vmem>>, vector<1x64x32xbf16>
    %443 = vector.shape_cast %442 : vector<1x64x32xbf16> to vector<64x32xbf16>
    %cst_191 = arith.constant dense<0.000000e+00> : vector<8x32xf32>
    %444 = tpu.matmul %417, %443, %cst_191 {dimension_numbers = #tpu.dot_dimension_numbers<[1], [0], [0], [1], [0, 0, 1, 1], [], []>} : vector<8x64xbf16>, vector<64x32xbf16>, vector<8x32xf32> -> vector<8x32xf32>
    %445 = arith.addf %329, %444 : vector<8x32xf32>
    %c2_192 = arith.constant 2 : index
    %c0_193 = arith.constant 0 : index
    %c0_194 = arith.constant 0 : index
    %446 = vector.load %arg12[%c2_192, %c0_193, %c0_194] : memref<3x1x32xf32, #tpu.memory_space<vmem>>, vector<1x1x32xf32>
    %447 = vector.shape_cast %446 : vector<1x1x32xf32> to vector<1x32xf32>
    %448 = vector.broadcast %447 : vector<1x32xf32> to vector<8x32xf32>
    %449 = arith.addf %445, %448 : vector<8x32xf32>
    %450 = vector.shape_cast %449 : vector<8x32xf32> to vector<1x8x32xf32>
    %c2_195 = arith.constant 2 : index
    %c0_196 = arith.constant 0 : index
    %c0_197 = arith.constant 0 : index
    %c0_198 = arith.constant 0 : index
    %451 = vector.load %arg13[%c2_195, %c0_196, %c0_197, %c0_198] : memref<3x1x8x32xf32, #tpu.memory_space<vmem>>, vector<1x1x8x32xf32>
    %452 = vector.shape_cast %451 : vector<1x1x8x32xf32> to vector<1x8x32xf32>
    %453 = vector.shape_cast %450 : vector<1x8x32xf32> to vector<1x1x8x32xf32>
    tpu.vector_store %arg13[%c2_195, %c0_196, %c0_197, %c0_198], %453 {strides = array<i32>} : memref<3x1x8x32xf32, #tpu.memory_space<vmem>>, vector<1x1x8x32xf32>,
    return
  }
  func.func @transform_0(%arg0: i32) -> (i32, i32, i32, i32) {
    %c0_i32 = arith.constant 0 : i32
    %c0_i32_0 = arith.constant 0 : i32
    %c0_i32_1 = arith.constant 0 : i32
    %c0_i32_2 = arith.constant 0 : i32
    return %c0_i32, %arg0, %c0_i32_0, %c0_i32_1 : i32, i32, i32, i32
  }
  func.func @transform_1(%arg0: i32) -> (i32, i32, i32) {
    %c0_i32 = arith.constant 0 : i32
    %c0_i32_0 = arith.constant 0 : i32
    %c0_i32_1 = arith.constant 0 : i32
    %c0_i32_2 = arith.constant 0 : i32
    return %c0_i32, %c0_i32_0, %c0_i32_1 : i32, i32, i32
  }
  func.func @transform_2(%arg0: i32) -> (i32, i32, i32) {
    %c0_i32 = arith.constant 0 : i32
    %c0_i32_0 = arith.constant 0 : i32
    %c0_i32_1 = arith.constant 0 : i32
    %c0_i32_2 = arith.constant 0 : i32
    return %c0_i32, %c0_i32_0, %c0_i32_1 : i32, i32, i32
  }
  func.func @transform_3(%arg0: i32) -> (i32, i32, i32) {
    %c0_i32 = arith.constant 0 : i32
    %c0_i32_0 = arith.constant 0 : i32
    %c0_i32_1 = arith.constant 0 : i32
    %c0_i32_2 = arith.constant 0 : i32
    return %c0_i32, %c0_i32_0, %c0_i32_1 : i32, i32, i32
  }
  func.func @transform_4(%arg0: i32) -> (i32, i32, i32) {
    %c0_i32 = arith.constant 0 : i32
    %c0_i32_0 = arith.constant 0 : i32
    %c0_i32_1 = arith.constant 0 : i32
    %c0_i32_2 = arith.constant 0 : i32
    return %c0_i32, %c0_i32_0, %c0_i32_1 : i32, i32, i32
  }
  func.func @transform_5(%arg0: i32) -> (i32, i32, i32) {
    %c0_i32 = arith.constant 0 : i32
    %c0_i32_0 = arith.constant 0 : i32
    %c0_i32_1 = arith.constant 0 : i32
    %c0_i32_2 = arith.constant 0 : i32
    return %c0_i32, %c0_i32_0, %c0_i32_1 : i32, i32, i32
  }
  func.func @transform_6(%arg0: i32) -> (i32, i32, i32) {
    %c0_i32 = arith.constant 0 : i32
    %c0_i32_0 = arith.constant 0 : i32
    %c0_i32_1 = arith.constant 0 : i32
    %c0_i32_2 = arith.constant 0 : i32
    return %c0_i32, %c0_i32_0, %c0_i32_1 : i32, i32, i32
  }
  func.func @transform_7(%arg0: i32) -> (i32, i32, i32) {
    %c0_i32 = arith.constant 0 : i32
    %c0_i32_0 = arith.constant 0 : i32
    %c0_i32_1 = arith.constant 0 : i32
    %c0_i32_2 = arith.constant 0 : i32
    return %c0_i32, %c0_i32_0, %c0_i32_1 : i32, i32, i32
  }
  func.func @transform_8(%arg0: i32) -> (i32, i32, i32) {
    %c0_i32 = arith.constant 0 : i32
    %c0_i32_0 = arith.constant 0 : i32
    %c0_i32_1 = arith.constant 0 : i32
    %c0_i32_2 = arith.constant 0 : i32
    return %c0_i32, %c0_i32_0, %c0_i32_1 : i32, i32, i32
  }
  func.func @transform_9(%arg0: i32) -> (i32, i32) {
    %c0_i32 = arith.constant 0 : i32
    %c0_i32_0 = arith.constant 0 : i32
    %c0_i32_1 = arith.constant 0 : i32
    return %c0_i32, %c0_i32_0 : i32, i32
  }
  func.func @transform_10(%arg0: i32) -> (i32, i32, i32) {
    %c0_i32 = arith.constant 0 : i32
    %c0_i32_0 = arith.constant 0 : i32
    %c0_i32_1 = arith.constant 0 : i32
    %c0_i32_2 = arith.constant 0 : i32
    return %c0_i32, %c0_i32_0, %c0_i32_1 : i32, i32, i32
  }
  func.func @transform_11(%arg0: i32) -> (i32, i32, i32) {
    %c0_i32 = arith.constant 0 : i32
    %c0_i32_0 = arith.constant 0 : i32
    %c0_i32_1 = arith.constant 0 : i32
    %c0_i32_2 = arith.constant 0 : i32
    return %c0_i32, %c0_i32_0, %c0_i32_1 : i32, i32, i32
  }
  func.func @transform_12(%arg0: i32) -> (i32, i32, i32, i32) {
    %c0_i32 = arith.constant 0 : i32
    %c0_i32_0 = arith.constant 0 : i32
    %c0_i32_1 = arith.constant 0 : i32
    %c0_i32_2 = arith.constant 0 : i32
    return %c0_i32, %arg0, %c0_i32_0, %c0_i32_1 : i32, i32, i32, i32
  }
}

</mosaic_0001>

<bundles_post_ra>
// kernel: tpu_custom_call.1
= control target key start
LH: loop header
LB: loop body
LE: loop exit
PB: predicated region body
PF: predicated region fallthrough
CT: control target
= control target key end

     0   :  { %s4441_s0 = inlined_call_operand.vmem [shape: f32[3,2,8,32], index: 0, kind: input, shape index: {}]   ;;  %s4442_s1 = inlined_call_operand.vmem [shape: f32[3,1,32], index: 1, kind: input, shape index: {}]   ;;  %s4443_s2 = inlined_call_operand.vmem [shape: f32[3,1,32], index: 2, kind: input, shape index: {}]   ;;  %s4444_s3 = inlined_call_operand.vmem [shape: bf16[3,32,96], index: 3, kind: input, shape index: {}]   ;;  %s4445_s4 = inlined_call_operand.vmem [shape: bf16[3,32,32], index: 4, kind: input, shape index: {}]   ;;  %s4446_s5 = inlined_call_operand.vmem [shape: f32[3,1,32], index: 5, kind: input, shape index: {}]   ;;  %s4447_s6 = inlined_call_operand.vmem [shape: f32[3,1,32], index: 6, kind: input, shape index: {}]   ;;  %s4448_s7 = inlined_call_operand.vmem [shape: f32[3,1,32], index: 7, kind: input, shape index: {}]   ;;  %s4449_s8 = inlined_call_operand.hbm [shape: bf16[3,32,64], index: 8, kind: input, shape index: {}]   ;;  %s4450_s9 = inlined_call_operand.vmem [shape: f32[1,64], index: 9, kind: input, shape index: {}]   ;;  %s4451_s10 = inlined_call_operand.vmem [shape: bf16[3,64,32], index: 10, kind: input, shape index: {}]   ;;  %s4452_s11 = inlined_call_operand.vmem [shape: f32[3,1,32], index: 11, kind: input, shape index: {}]   ;;  %s4453_s12 = inlined_call_operand.hbm [shape: f32[3,2,8,32], index: 12, kind: output, shape index: {}]  }
   0x1   :  { %4490 = sst [smem:[#allocation15_spill]] %s4441_s0 }
   0x2   :  { %4491 = sst [smem:[#allocation16_spill]] %s4449_s8 }
   0x3   :  { %4492 = sst [smem:[#allocation17_spill]] %s4453_s12 }
   0x4   :  { %17 = vsyncpa [#allocation4], 0 }
   0x5   :  { %18 = vsyncpa [#allocation5], 0 }
   0x6   :  { %20 = vsyncpa [#allocation5 + $0x1], 0  ;;  %s3793_s21 = smov 0   ;;  %s3795_s22 = smov 0  }
   0x7   :  { %s3797_s23 = smov 0   ;;  %s3799_s24 = smov 0  }
   0x8 LB: > { %4493 = sst [smem:[#allocation9_spill]] %s3692_s21  ;;  %s3814_s25 = sadd.s32 4294967295, %s3704_s24   ;;  %s3704_s24 = sphi %s3799_s24, %s4532_s24   ;;  %s3700_s23 = sphi %s3797_s23, %s4534_s23   ;;  %s3696_s22 = sphi %s3795_s22, %s4536_s22   ;;  %s3692_s21 = sphi %s3793_s21, %s4535_s21  }
   0x9   : > { %4494 = sst [smem:[#allocation10_spill]] %s3700_s23  ;;  %s2963_s26 = sadd.s32 4294967294, %s3704_s24  }
   0xa   : > { %4495 = sst [smem:[#allocation11_spill]] %s3704_s24  ;;  %s3818_s27 = sadd.s32 1, %s3704_s24  }
   0xb   : > { %4496 = sst [smem:[#allocation12_spill]] %s3818_s27  ;;  %s33_s28 = sadd.s32 1, %s3700_s23 }
   0xc   : > { %s30_s29 = ssub.s32 %s3704_s24, %s3818_s27  ;;  %p40_p0 = scmp.ne.s32.totalorder %s3700_s23, %s3696_s22 }
   0xd   : > { %p31_p1 = scmp.eq.s32.totalorder %s30_s29, 0  ;;  %p41_p2 = scmp.eq.s32.totalorder %s3704_s24, 0 }
   0xe   : > { %p301_p3 = scmp.eq.s32.totalorder %s3814_s25, 1  ;;  %p306_p4 = scmp.ne.s32.totalorder %s3696_s22, %s3692_s21 }
   0xf   : > { %s3830_s30 = scalar_select %p31_p1, %s3700_s23, %s33_s28  }
  0x10   : > { %p3832_p5 = por %p41_p2, %p40_p0  ;;  %p3836_p6 = por %p301_p3, %p40_p0 }
  0x11   : > { %4497 = sst [smem:[#allocation13_spill]] %s3830_s30  ;;  %p307_p7 = scmp.eq.s32.totalorder %s2963_s26, 1 }
  0x12   : > { %s4498_s13 = scalar_select %p3832_p5, 1, 0 }
  0x13   : > { %s4499_s14 = scalar_select %p3836_p6, 1, 0 }
  0x14   : > { %p2964_p8 = scmp.ge.s32.totalorder %s3704_s24, 1  ;;  %p314_p9 = scmp.lt.s32.totalorder %s3704_s24, 3 }
  0x15   : > { %p3842_p10 = por %p307_p7, %p306_p4  ;;  %p4457_p11 = scmp.eq.s32.totalorder %s3814_s25, 0 }
  0x16   : > { %p3847_p12 = pnand %p2964_p8, %p314_p9  ;;  %s3706_s17 = smov [#allocation3]  }
  0x17   : > { %s4500_s15 = scalar_select %p3842_p10, 1, 0 }
  0x18   : > { %s4502_s16 = scalar_select %p3847_p12, 1, 0 }
  0x19   : > { %4501 = sst [smem:[#allocation14_spill]] %s4500_s15  ;;  %s347_s18 = sshll.u32 %s3706_s17, 4  ;;  %s348_s18 = int_to_ptr.vmem [resolvable:$true] %s347_s18 }
  0x1a   : > { %p3456_p13 = pneg %p3847_p12  ;;  %s4504_s8 = sld [smem:[#allocation16_spill]] }
  0x1c   : > { %p3855_p0 = pnand %p4457_p11, %p3456_p13 }
  0x1e   : > { %p3612_p2 = pneg %p3855_p0 }
  0x20   : > { %s3610_s28 = scalar_lea.hbm %s4504_s8, 768 }
  0x21   : > { %p3611_p1 = scmp.ne.s32.totalorder %s4504_s8, %s3610_s28  ;;  %p3617_p7 = scmp.lt.u32.totalorder %s3610_s28, %s4504_s8 }
  0x23   : > { %p3613_p3 = pnand %p3612_p2, %p3611_p1 }
  0x25   : > { %p3614_p4 = pneg %p3613_p3 }
  0x27   : > { %p3619_p8 = pnand %p3617_p7, %p3614_p4 }
  0x29   : > { %3622 = shalt.err (!%p3619_p8)
}
  0x2a   : > { %s3623_s15 = scalar_lea.vmem %s348_s18, 768  ;;  %p3631_p10 = scmp.lt.s32.totalorder %s348_s18, %s348_s18 }
  0x2b   : > { %p3624_p9 = scmp.ne.s32.totalorder %s348_s18, %s3623_s15  ;;  %p3632_p6 = scmp.lt.s32.totalorder %s3623_s15, %s3623_s15 }
  0x2d   : > { %p3626_p13 = pnand %p3624_p9, %p3612_p2  ;;  %p3633_p12 = por %p3632_p6, %p3631_p10 }
  0x2f   : > { %p3627_p11 = pneg %p3626_p13 }
  0x31   : > { %p3634_p5 = pnand %p3633_p12, %p3627_p11 }
  0x33   : > { %3637 = shalt.err (!%p3634_p5)
}
  0x34   : > { %s3707_s30 = smov 64   ;;  %s3708_s20 = smov 4  }
  0x35   : > { %3459 = dma.hbm_to_vmem [thread:$0]  (!%p3855_p0), %s4504_s8, 768, %s348_s18, [#allocation4], %s3707_s30, %s3707_s30, %s3708_s20  }
  0x36   : > { %p2966_p1 = scmp.ge.s32.totalorder %s3704_s24, 2 }
  0x37   : > { %p4505_p2 = scmp.ne.s32.totalorder (!%p2966_p1), %s4498_s13, 0 }
  0x38   : > { %366 = sbr.rel (%p2966_p1) target bundleno = 75 (0x4b), region = 60 }
  0x3f   : > { %369 = sbr.rel (!%p4505_p2) target bundleno = 75 (0x4b), region = 64  ;;  %s371_s27 = sand.u32 (%p4505_p2), 1, %s3700_s23  }
  0x40   : > { %s2967_s15 = sshll.u32 (%p4505_p2), %s3704_s24, 3  ;;  %s3448_s28 = smul.u32 (%p4505_p2), 24, %s371_s27 }
  0x41   : > { %s4506_s0 = sld [smem:[#allocation15_spill]] (%p4505_p2) }
  0x42   : > { %s373_s18 = scalar_lea.vmem (%p4505_p2), [#allocation2], %s3448_s28 }
  0x47   : > { %s375_s19 = scalar_lea.vmem %s4506_s0, %s2967_s15 }
  0x48   : > { %v407_v0 = vld [vmem:[%s375_s19] sm:$0xff]  ;;  %v409_v1 = vld [vmem:[%s375_s19 + $0x10] sm:$0xff] }
  0x49   : > { %v411_v2 = vld [vmem:[%s375_s19 + $0x20] sm:$0xff]  ;;  %408 = vst [vmem:[%s373_s18] sm:$0xff] %v407_v0  ;;  %410 = vst [vmem:[%s373_s18 + $0x8] sm:$0xff] %v409_v1 }
  0x4a   : > { %412 = vst [vmem:[%s373_s18 + $0x10] sm:$0xff] %v411_v2 }
  0x4b PF: > { %p4507_p5 = scmp.ne.s32.totalorder %s4502_s16, 0 }
  0x4c   : > { %s4461_s13 = sand.u32 (!%p4507_p5), 1, %s3696_s22   ;;  %p4508_p6 = scmp.eq.s32.totalorder (!%p4507_p5), %s3814_s25, 0 }
  0x4d   : > { %421 = sbr.rel (%p4507_p5) target bundleno = 4554 (0x11ca), region = 102 }
  0x4e   : > { %s3890_s30 = smul.u32 (!%p4507_p5), 24, %s4461_s13 }
  0x50   : > { %s3893_s21 = scalar_lea.vmem (!%p4507_p5), [#allocation2], %s3890_s30 }
  0x54   : > { %3683 = dma.done.wait (%p4508_p6), [#allocation4], 768   ;;  %p4509_p10 = pmov %p4508_p6 }
  0x55   : > { %vm473_vm0 = vcmask 261120   ;;  %v470_v3 = vld [vmem:[%s3893_s21] sm:$0xff]  ;;  %v3709_v11 = vmov 0.0   ;;  %vm3710_vm1 = vmmov 0   ;;  %v3521_v12 = vld [vmem:[%s4444_s3 + $0x8] sm:$0xff]   ;;  %s4476_s19 = smov 120  }
  0x56   : > { %3685 = vsyncadd (%p4509_p10), [#allocation4], 4294966528  ;;  %v474_v4 = vsel %vm473_vm0, %v470_v3, 0.0  ;;  %v3520_v10 = vld [vmem:[%s4444_s3] sm:$0xff]   ;;  %3196 = vmatprep.subr.bf16.mxu0 %v3709_v11  ;;  %3200 = vmatprep.mubr.msk.bf16.mxu0 %vm3710_vm1, %v3709_v11  ;;  %s4479_s18 = smov 96   ;;  %s4480_s16 = smov 88  }
  0x57   : > { %475 = vadd.xlane.f32.xlu0 %v474_v4  ;;  %3197 = vmatpush3.bf16.msra.mxu0 %v3520_v10  ;;  %v2970_v17 = vld [vmem:[%s4442_s1] ss:$0 sm:$0xff]  ;;  %s4478_s20 = smov 80   ;;  %s4472_s26 = smov 112   ;;  %vm566_vm2 = vcmask 64512   ;;  %vm630_vm3 = vcmask 1043456  }
  0x58   : > { %3204 = vmatprep.subr.bf16.mxu1 %v3709_v11  ;;  %3198 = vmatprep.subr.bf16.mxu0 %v3709_v11  ;;  %v2971_v19 = vld [vmem:[%s4443_s2] ss:$0 sm:$0xff]  ;;  %s4474_s29 = smov 72   ;;  %s4470_s27 = smov 104   ;;  %vm1017_vm4 = vcmask 130048   ;;  %vm1019_vm5 = vcmask 195584  }
  0x59   : > { %3206 = vmatprep.mubr.msk.bf16.mxu1 %vm3710_vm1, %v3709_v11  ;;  %v2987_v50 = vld [vmem:[%s3893_s21 + $0x8] sm:$0xff]  ;;  %s4468_s15 = smov 64   ;;  %s4466_s28 = smov 48   ;;  %vm2646_vm6 = vcmask 523264  }
  0x5a   : > { %v1096_v55 = vsel %vm473_vm0, %v2987_v50, 0.0  ;;  %s4464_s17 = smov 56   ;;  %s4462_s13 = smov 40  }
  0x5b   : > { %3199 = vmatpush3.bf16.msra.mxu0 %v3521_v12  ;;  %s4518_s12 = smov 8   ;;  %s4519_s23 = smov 16  }
  0x5c   : > { %3210 = vmatprep.subr.bf16.mxu0 %v3709_v11  ;;  %s4522_s0 = smov 96   ;;  %s4523_s8 = smov 80  }
  0x5d   : > { %s4524_s24 = sld [smem:[#allocation17_spill]]  ;;  %p4527_p12 = scmp.ne.s32.totalorder %s4499_s14, 0 }
  0xe4   : > { %v476_v5 = vpop.xlane.xlu0 %475 }
  0xe5   : > { %v478_v6 = vmul.f32 0.03125, %v476_v5 }
  0xe7   : > { %v479_v7 = vsub.f32 %v470_v3, %v478_v6 }
  0xe9   : > { %v480_v8 = vmul.f32 %v479_v7, %v479_v7 }
  0xeb   : > { %v481_v9 = vsel %vm473_vm0, %v480_v8, 0.0 }
  0xec   : > { %482 = vadd.xlane.f32.xlu0 %v481_v9 }
 0x179   : > { %v483_v13 = vpop.xlane.xlu0 %482 }
 0x17a   : > { %v484_v14 = vmul.f32 0.03125, %v483_v13 }
 0x17c   : > { %v485_v15 = vadd.f32 1e-05, %v484_v14 }
 0x17e   : > { %3550 = vrsqrt.f32 %v485_v15 }
 0x188   : > { %v3551_v16 = vpop.eup %3550 }
 0x189   : > { %v487_v18 = vmul.f32 %v3551_v16, %v479_v7 }
 0x18b   : > { %v494_v20 = vmul.f32 %v2970_v17, %v487_v18 }
 0x18d   : > { %v501_v21 = vadd.f32 %v2971_v19, %v494_v20 }
 0x18f   : > { %v502_v22 = vpack.c.bf16 %v501_v21, %v501_v21 }
 0x191   : > { %3201 = vmatmul.mubr.msk.bf16.vlgmr.msra.gmra.mrb[0].mxu0 %vm473_vm0, %v502_v22 }
 0x192   : > { %3212 = vmatprep.mubr.msk.bf16.mxu0 %vm3710_vm1, %v3709_v11 }
 0x264   : > { %v556_v23 = vpop.f32.mrb[0].mxu0 }
 0x265   : > { %v3925_v24 = vpack.c.bf16 %v556_v23, %v556_v23  ;;  %v3202_v25 = vpop.f32.mrb[1].mxu0 }
 0x266   : > { %v559_v26 = vpop.f32.mrb[2].mxu0 }
 0x267   : > { %674 = vrot.lane.b32.xlu0 %v3925_v24, %s4476_s19  ;;  %564 = vrot.lane.b32.xlu1 %v3925_v24, %s4479_s18  ;;  %v3203_v27 = vpop.f32.mrb[3].mxu0  ;;  %s4512_s19 = smov 112  }
 0x26b   : > { %676 = vrot.lane.b32.xlu1 %v3925_v24, %s4480_s16 }
 0x26f   : > { %786 = vrot.lane.b32.xlu1 %v3925_v24, %s4478_s20 }
 0x273   : > { %784 = vrot.lane.b32.xlu1 %v3925_v24, %s4472_s26  ;;  %s4485_s26 = smov 8  }
 0x277   : > { %896 = vrot.lane.b32.xlu1 %v3925_v24, %s4474_s29  ;;  %s4483_s29 = smov 16  }
 0x27b   : > { %894 = vrot.lane.b32.xlu1 %v3925_v24, %s4470_s27  ;;  %s4513_s27 = smov 104  }
 0x2d9   : > { %v565_v28 = vpop.permute.xlu1 %564  ;;  %v675_v33 = vpop.permute.xlu0 %674 }
 0x2da   : > { %v571_v29 = vsel %vm566_vm2, %v565_v28, 0 }
 0x2db   : > { %3205 = vmatpush3.bf16.xpose.msra.mxu1 %v571_v29 }
 0x2dc   : > { %3216 = vmatprep.subr.bf16.mxu1 %v3709_v11 }
 0x2dd   : > { %v677_v30 = vpop.permute.xlu1 %676 }
 0x2de   : > { %v682_v31 = vsel %vm566_vm2, %v677_v30, 0 }
 0x2e1   : > { %v787_v32 = vpop.permute.xlu1 %786 }
 0x2e2   : > { %3207 = vmatmul.mubr.msk.bf16.vlgmr.msra.gmra.mrb[0].mxu1 %vm566_vm2, %v3925_v24  ;;  %v792_v35 = vsel %vm566_vm2, %v787_v32, 0 }
 0x2e3   : > { %3217 = vmatpush3.bf16.xpose.msra.mxu1 %v682_v31  ;;  %3218 = vmatprep.mubr.msk.bf16.mxu1 %vm3710_vm1, %v3709_v11 }
 0x2e4   : > { %3228 = vmatprep.subr.bf16.mxu1 %v3709_v11 }
 0x2e5   : > { %v785_v34 = vpop.permute.xlu1 %784 }
 0x2e9   : > { %v897_v36 = vpop.permute.xlu1 %896 }
 0x2ea   : > { %3219 = vmatmul.mubr.msk.bf16.vlgmr.msra.gmra.mrb[4].mxu1 %vm566_vm2, %v675_v33  ;;  %v902_v37 = vsel %vm566_vm2, %v897_v36, 0 }
 0x2eb   : > { %3229 = vmatpush3.bf16.xpose.msra.mxu1 %v792_v35  ;;  %3230 = vmatprep.mubr.msk.bf16.mxu1 %vm3710_vm1, %v3709_v11 }
 0x2ec   : > { %3240 = vmatprep.subr.bf16.mxu1 %v3709_v11 }
 0x2ed   : > { %v895_v38 = vpop.permute.xlu1 %894 }
 0x2f2   : > { %3231 = vmatmul.mubr.msk.bf16.vlgmr.msra.gmra.mrb[8].mxu1 %vm566_vm2, %v785_v34 }
 0x2f3   : > { %3241 = vmatpush3.bf16.xpose.msra.mxu1 %v902_v37  ;;  %3242 = vmatprep.mubr.msk.bf16.mxu1 %vm3710_vm1, %v3709_v11 }
 0x2f4   : > { %3252 = vmatprep.subr.bf16.mxu1 %v3709_v11 }
 0x2fa   : > { %3243 = vmatmul.mubr.msk.bf16.vlgmr.msra.gmra.mrb[12].mxu1 %vm566_vm2, %v895_v38 }
 0x2fb   : > { %3256 = vmatprep.mubr.msk.bf16.mxu1 %vm3710_vm1, %v3709_v11 }
 0x3b5   : > { %v607_v39 = vpop.f32.mrb[0].mxu1 }
 0x3b6   : > { %v3208_v40 = vpop.f32.mrb[1].mxu1  ;;  %v613_v41 = vsel %vm566_vm2, %v607_v39, -inf }
 0x3b7   : > { %614 = vmax.xlane.f32.xlu1 %v613_v41  ;;  %v610_v42 = vpop.f32.mrb[2].mxu1 }
 0x3b8   : > { %v3209_v43 = vpop.f32.mrb[3].mxu1 }
 0x3bd   : > { %v718_v44 = vpop.f32.mrb[4].mxu1 }
 0x3be   : > { %v3220_v45 = vpop.f32.mrb[5].mxu1  ;;  %v724_v46 = vsel %vm566_vm2, %v718_v44, -inf }
 0x3bf   : > { %725 = vmax.xlane.f32.xlu0 %v724_v46  ;;  %v721_v47 = vpop.f32.mrb[6].mxu1 }
 0x3c0   : > { %v3221_v48 = vpop.f32.mrb[7].mxu1 }
 0x3c5   : > { %v828_v49 = vpop.f32.mrb[8].mxu1 }
 0x3c6   : > { %v3232_v51 = vpop.f32.mrb[9].mxu1  ;;  %v834_v52 = vsel %vm566_vm2, %v828_v49, -inf }
 0x3c7   : > { %835 = vmax.xlane.f32.xlu1 %v834_v52  ;;  %v831_v53 = vpop.f32.mrb[10].mxu1  ;;  %v3522_v52 = vld [vmem:[%s4444_s3 + $0x10] sm:$0xff]  }
 0x3c8   : > { %v3233_v54 = vpop.f32.mrb[11].mxu1 }
 0x3cb   : > { %1097 = vadd.xlane.f32.xlu1 %v1096_v55  ;;  %v2991_v55 = vld [vmem:[%s4443_s2 + $0x1] ss:$0 sm:$0xff] }
 0x3cd   : > { %v938_v56 = vpop.f32.mrb[12].mxu1 }
 0x3ce   : > { %v3244_v57 = vpop.f32.mrb[13].mxu1  ;;  %v944_v58 = vsel %vm566_vm2, %v938_v56, -inf }
 0x3cf   : > { %945 = vmax.xlane.f32.xlu0 %v944_v58  ;;  %v941_v59 = vpop.f32.mrb[14].mxu1 }
 0x3d0   : > { %v3245_v60 = vpop.f32.mrb[15].mxu1 }
 0x3dc   : > { %625 = vrot.lane.b32.xlu1 %v3925_v24, %s4468_s15  ;;  %s4514_s15 = smov 64  }
 0x444   : > { %v615_v61 = vpop.xlane.xlu1 %614 }
 0x445   : > { %v616_v0 = vsub.f32 %v607_v39, %v615_v61 }
 0x447   : > { %v617_v2 = vmul.f32 1.442695, %v616_v0 }
 0x44c   : > { %v726_v62 = vpop.xlane.xlu0 %725 }
 0x44d   : > { %v727_v63 = vsub.f32 %v718_v44, %v726_v62 }
 0x44f   : > { %v728_v1 = vmul.f32 1.442695, %v727_v63  ;;  %v3524_v63 = vld [vmem:[%s4445_s4] sm:$0xff]  }
 0x450   : > { %3253 = vmatpush3.bf16.msra.mxu1 %v3524_v63 }
 0x451   : > { %3552 = vpow2.f32 %v728_v1  ;;  %3254 = vmatprep.subr.bf16.mxu1 %v3709_v11 }
 0x452   : > { %3554 = vpow2.f32 %v617_v2 }
 0x454   : > { %v836_v3 = vpop.xlane.xlu1 %835 }
 0x455   : > { %v837_v4 = vsub.f32 %v828_v49, %v836_v3 }
 0x457   : > { %v838_v5 = vmul.f32 1.442695, %v837_v4 }
 0x458   : > { %v1098_v6 = vpop.xlane.xlu1 %1097 }
 0x459   : > { %v1099_v7 = vmul.f32 0.03125, %v1098_v6  ;;  %3556 = vpow2.f32 %v838_v5 }
 0x45b   : > { %v3553_v8 = vpop.eup %3552  ;;  %v3970_v9 = vsub.f32 %v2987_v50, %v1099_v7  ;;  %v2990_v50 = vld [vmem:[%s4442_s1 + $0x1] ss:$0 sm:$0xff] }
 0x45c   : > { %v626_v10 = vpop.permute.xlu1 %625  ;;  %v730_v12 = vsel %vm566_vm2, %v3553_v8, 0.0  ;;  %v3555_v16 = vpop.eup %3554 }
 0x45d   : > { %v632_v13 = vsel %vm630_vm3, %v626_v10, 0  ;;  %731 = vadd.xlane.f32.xlu1 %v730_v12  ;;  %v1101_v14 = vmul.f32 %v3970_v9, %v3970_v9  ;;  %v619_v17 = vsel %vm566_vm2, %v3555_v16, 0.0  ;;  %v946_v20 = vpop.xlane.xlu0 %945 }
 0x45e   : > { %3211 = vmatpush3.bf16.msra.mxu0 %v632_v13  ;;  %v947_v21 = vsub.f32 %v938_v56, %v946_v20  ;;  %v3523_v56 = vld [vmem:[%s4444_s3 + $0x18] sm:$0xff]  }
 0x45f   : > { %v1102_v15 = vsel %vm473_vm0, %v1101_v14, 0.0  ;;  %3222 = vmatprep.subr.bf16.mxu0 %v3709_v11 }
 0x460   : > { %1103 = vadd.xlane.f32.xlu0 %v1102_v15  ;;  %v948_v22 = vmul.f32 1.442695, %v947_v21 }
 0x462   : > { %3558 = vpow2.f32 %v948_v22 }
 0x463   : > { %v3557_v18 = vpop.eup %3556 }
 0x464   : > { %620 = vadd.xlane.f32.xlu0 %v619_v17  ;;  %v840_v19 = vsel %vm566_vm2, %v3557_v18, 0.0 }
 0x468   : > { %841 = vadd.xlane.f32.xlu0 %v840_v19 }
 0x46c   : > { %v3559_v23 = vpop.eup %3558 }
 0x46d   : > { %v950_v25 = vsel %vm566_vm2, %v3559_v23, 0.0 }
 0x46e   : > { %846 = vrot.lane.b32.xlu1 %v3925_v24, %s4466_s28  ;;  %s4481_s28 = smov 24  }
 0x47e   : > { %736 = vrot.lane.b32.xlu0 %v3925_v24, %s4464_s17  ;;  %s4510_s17 = smov 120  }
 0x492   : > { %951 = vadd.xlane.f32.xlu1 %v950_v25 }
 0x4a3   : > { %956 = vrot.lane.b32.xlu1 %v3925_v24, %s4462_s13  ;;  %s4511_s13 = smov 72  }
 0x4ea   : > { %v732_v28 = vpop.xlane.xlu1 %731 }
 0x4ed   : > { %v1104_v26 = vpop.xlane.xlu0 %1103 }
 0x4ee   : > { %v847_v36 = vpop.permute.xlu1 %846  ;;  %v1105_v42 = vmul.f32 0.03125, %v1104_v26 }
 0x4ef   : > { %v852_v39 = vsel %vm630_vm3, %v847_v36, 0 }
 0x4f0   : > { %v1106_v43 = vadd.f32 1e-05, %v1105_v42 }
 0x4f1   : > { %v621_v27 = vpop.xlane.xlu0 %620 }
 0x4f2   : > { %3560 = vrcp.f32 %v621_v27 }
 0x4f3   : > { %3562 = vrcp.f32 %v732_v28 }
 0x4f5   : > { %v842_v29 = vpop.xlane.xlu0 %841 }
 0x4f6   : > { %3564 = vrcp.f32 %v842_v29 }
 0x4f7   : > { %3566 = vrsqrt.f32 %v1106_v43 }
 0x4f9   : > { %v737_v32 = vpop.permute.xlu0 %736 }
 0x4fa   : > { %v742_v35 = vsel %vm630_vm3, %v737_v32, 0 }
 0x4fc   : > { %v3561_v30 = vpop.eup %3560 }
 0x4fd   : > { %v623_v31 = vmul.f32 %v3561_v30, %v3555_v16  ;;  %v3563_v34 = vpop.eup %3562 }
 0x4fe   : > { %v734_v24 = vmul.f32 %v3563_v34, %v3553_v8  ;;  %v3525_v8 = vld [vmem:[%s4445_s4 + $0x8] sm:$0xff]  }
 0x4ff   : > { %v624_v33 = vpack.c.bf16 %v623_v31, %v623_v31  ;;  %3255 = vmatpush3.bf16.msra.mxu1 %v3525_v8 }
 0x500   : > { %v735_v37 = vpack.c.bf16 %v734_v24, %v734_v24  ;;  %v3565_v38 = vpop.eup %3564  ;;  %3268 = vmatprep.subr.bf16.mxu1 %v3709_v11 }
 0x501   : > { %3213 = vmatmul.mubr.msk.bf16.vlgmr.msra.gmra.mrb[4].mxu0 %vm566_vm2, %v624_v33  ;;  %v844_v40 = vmul.f32 %v3565_v38, %v3557_v18  ;;  %v3567_v47 = vpop.eup %3566 }
 0x502   : > { %3223 = vmatpush3.bf16.msra.mxu0 %v742_v35  ;;  %3224 = vmatprep.mubr.msk.bf16.mxu0 %vm3710_vm1, %v3709_v11  ;;  %v1108_v48 = vmul.f32 %v3567_v47, %v3970_v9  ;;  %v4081_v47 = vld [vmem:[%s3893_s21 + $0x10] sm:$0xff] }
 0x503   : > { %3234 = vmatprep.subr.bf16.mxu0 %v3709_v11  ;;  %v845_v41 = vpack.c.bf16 %v844_v40, %v844_v40 }
 0x504   : > { %v1115_v54 = vmul.f32 %v2990_v50, %v1108_v48 }
 0x506   : > { %v1122_v57 = vadd.f32 %v2991_v55, %v1115_v54 }
 0x508   : > { %v1123_v58 = vpack.c.bf16 %v1122_v57, %v1122_v57 }
 0x509   : > { %3225 = vmatmul.mubr.msk.bf16.vlgmr.msra.gmra.mrb[8].mxu0 %vm566_vm2, %v735_v37 }
 0x50a   : > { %3235 = vmatpush3.bf16.msra.mxu0 %v852_v39  ;;  %3236 = vmatprep.mubr.msk.bf16.mxu0 %vm3710_vm1, %v3709_v11 }
 0x50b   : > { %3246 = vmatprep.subr.bf16.mxu0 %v3709_v11 }
 0x511   : > { %3237 = vmatmul.mubr.msk.bf16.vlgmr.msra.gmra.mrb[12].mxu0 %vm566_vm2, %v845_v41 }
 0x512   : > { %3248 = vmatprep.mubr.msk.bf16.mxu0 %vm3710_vm1, %v3709_v11 }
 0x51f   : > { %v952_v44 = vpop.xlane.xlu1 %951 }
 0x520   : > { %3568 = vrcp.f32 %v952_v44 }
 0x523   : > { %v957_v45 = vpop.permute.xlu1 %956 }
 0x524   : > { %v962_v46 = vsel %vm630_vm3, %v957_v45, 0 }
 0x525   : > { %3247 = vmatpush3.bf16.msra.mxu0 %v962_v46 }
 0x526   : > { %3260 = vmatprep.subr.bf16.mxu0 %v3709_v11 }
 0x52a   : > { %v3569_v49 = vpop.eup %3568 }
 0x52b   : > { %v954_v51 = vmul.f32 %v3569_v49, %v3559_v23 }
 0x52d   : > { %v955_v53 = vpack.c.bf16 %v954_v51, %v954_v51 }
 0x52f   : > { %3249 = vmatmul.mubr.msk.bf16.vlgmr.msra.gmra.mrb[16].mxu0 %vm566_vm2, %v955_v53 }
 0x530   : > { %3261 = vmatpush3.bf16.msra.mxu0 %v3522_v52  ;;  %3264 = vmatprep.mubr.msk.bf16.mxu0 %vm3710_vm1, %v3709_v11  ;;  %v1716_v52 = vsel %vm473_vm0, %v4081_v47, 0.0 }
 0x531   : > { %3262 = vmatprep.subr.bf16.mxu0 %v3709_v11 }
 0x534   : > { %3263 = vmatpush3.bf16.msra.mxu0 %v3523_v56 }
 0x535   : > { %3274 = vmatprep.subr.bf16.mxu0 %v3709_v11 }
 0x537   : > { %3265 = vmatmul.mubr.msk.bf16.vlgmr.msra.gmra.mrb[20].mxu0 %vm473_vm0, %v1123_v58 }
 0x538   : > { %3276 = vmatprep.mubr.msk.bf16.mxu0 %vm3710_vm1, %v3709_v11 }
 0x5d4   : > { %v668_v59 = vpop.f32.mrb[4].mxu0 }
 0x5d5   : > { %v3214_v60 = vpop.f32.mrb[5].mxu0 }
 0x5d6   : > { %v671_v61 = vpop.f32.mrb[6].mxu0 }
 0x5d7   : > { %v3215_v62 = vpop.f32.mrb[7].mxu0 }
 0x5dc   : > { %v778_v0 = vpop.f32.mrb[8].mxu0 }
 0x5dd   : > { %1005 = vrot.lane.b32.xlu0 %v778_v0, %s4485_s26  ;;  %v3226_v1 = vpop.f32.mrb[9].mxu0  ;;  %s4525_s26 = smov %s4524_s24 }
 0x5de   : > { %v781_v2 = vpop.f32.mrb[10].mxu0 }
 0x5df   : > { %v3227_v3 = vpop.f32.mrb[11].mxu0 }
 0x5e4   : > { %v888_v4 = vpop.f32.mrb[12].mxu0 }
 0x5e5   : > { %1009 = vrot.lane.b32.xlu1 %v888_v4, %s4483_s29  ;;  %v3238_v5 = vpop.f32.mrb[13].mxu0  ;;  %s4520_s29 = smov 24  }
 0x5e6   : > { %v891_v6 = vpop.f32.mrb[14].mxu0 }
 0x5e7   : > { %v3239_v7 = vpop.f32.mrb[15].mxu0 }
 0x602   : > { %v998_v9 = vpop.f32.mrb[16].mxu0 }
 0x603   : > { %1013 = vrot.lane.b32.xlu0 %v998_v9, %s4481_s28  ;;  %v3250_v10 = vpop.f32.mrb[17].mxu0  ;;  %s4521_s28 = smov 88  }
 0x604   : > { %v1001_v12 = vpop.f32.mrb[18].mxu0 }
 0x605   : > { %v3251_v13 = vpop.f32.mrb[19].mxu0 }
 0x60a   : > { %v1178_v14 = vpop.f32.mrb[20].mxu0 }
 0x60b   : > { %v4034_v15 = vpack.c.bf16 %v1178_v14, %v1178_v14  ;;  %v3266_v16 = vpop.f32.mrb[21].mxu0 }
 0x60c   : > { %v1181_v17 = vpop.f32.mrb[22].mxu0 }
 0x60d   : > { %1296 = vrot.lane.b32.xlu0 %v4034_v15, %s4480_s16  ;;  %1186 = vrot.lane.b32.xlu1 %v4034_v15, %s4479_s18  ;;  %v3267_v18 = vpop.f32.mrb[23].mxu0  ;;  %s4516_s18 = smov 56   ;;  %s4517_s16 = smov 40  }
 0x611   : > { %1406 = vrot.lane.b32.xlu0 %v4034_v15, %s4478_s20  ;;  %1294 = vrot.lane.b32.xlu1 %v4034_v15, %s4510_s17  ;;  %s4515_s20 = smov 48  }
 0x615   : > { %1516 = vrot.lane.b32.xlu0 %v4034_v15, %s4511_s13  ;;  %1404 = vrot.lane.b32.xlu1 %v4034_v15, %s4512_s19 }
 0x619   : > { %1514 = vrot.lane.b32.xlu1 %v4034_v15, %s4513_s27 }
 0x64f   : > { %v1006_v19 = vpop.permute.xlu0 %1005 }
 0x650   : > { %v1016_v21 = vsel %vm566_vm2, %v668_v59, %v1006_v19 }
 0x657   : > { %v1010_v20 = vpop.permute.xlu1 %1009 }
 0x658   : > { %v1018_v22 = vsel %vm1017_vm4, %v1016_v21, %v1010_v20 }
 0x675   : > { %v1014_v23 = vpop.permute.xlu0 %1013 }
 0x676   : > { %v1020_v25 = vsel %vm1019_vm5, %v1018_v22, %v1014_v23 }
 0x677   : > { %v1021_v26 = vpack.c.bf16 %v1020_v25, %v1020_v25 }
 0x679   : > { %3257 = vmatmul.mubr.msk.bf16.vlgmr.msra.gmra.mrb[16].mxu1 %vm473_vm0, %v1021_v26 }
 0x67a   : > { %3270 = vmatprep.mubr.msk.bf16.mxu1 %vm3710_vm1, %v3709_v11 }
 0x67f   : > { %v1187_v27 = vpop.permute.xlu1 %1186  ;;  %v1297_v29 = vpop.permute.xlu0 %1296 }
 0x680   : > { %v1192_v28 = vsel %vm566_vm2, %v1187_v27, 0  ;;  %v1302_v30 = vsel %vm566_vm2, %v1297_v29, 0 }
 0x681   : > { %3269 = vmatpush3.bf16.xpose.msra.mxu1 %v1192_v28 }
 0x682   : > { %3280 = vmatprep.subr.bf16.mxu1 %v3709_v11 }
 0x683   : > { %v1407_v31 = vpop.permute.xlu0 %1406  ;;  %v1295_v32 = vpop.permute.xlu1 %1294 }
 0x684   : > { %v1412_v33 = vsel %vm566_vm2, %v1407_v31, 0 }
 0x687   : > { %v1517_v34 = vpop.permute.xlu0 %1516  ;;  %v1405_v35 = vpop.permute.xlu1 %1404 }
 0x688   : > { %3271 = vmatmul.mubr.msk.bf16.vlgmr.msra.gmra.mrb[20].mxu1 %vm566_vm2, %v4034_v15  ;;  %v1522_v24 = vsel %vm566_vm2, %v1517_v34, 0 }
 0x689   : > { %3281 = vmatpush3.bf16.xpose.msra.mxu1 %v1302_v30  ;;  %3282 = vmatprep.mubr.msk.bf16.mxu1 %vm3710_vm1, %v3709_v11 }
 0x68a   : > { %3292 = vmatprep.subr.bf16.mxu1 %v3709_v11 }
 0x68b   : > { %v1515_v36 = vpop.permute.xlu1 %1514 }
 0x690   : > { %3283 = vmatmul.mubr.msk.bf16.vlgmr.msra.gmra.mrb[24].mxu1 %vm566_vm2, %v1295_v32 }
 0x691   : > { %3293 = vmatpush3.bf16.xpose.msra.mxu1 %v1412_v33  ;;  %3294 = vmatprep.mubr.msk.bf16.mxu1 %vm3710_vm1, %v3709_v11 }
 0x692   : > { %3304 = vmatprep.subr.bf16.mxu1 %v3709_v11 }
 0x698   : > { %3295 = vmatmul.mubr.msk.bf16.vlgmr.msra.gmra.mrb[28].mxu1 %vm566_vm2, %v1405_v35 }
 0x699   : > { %3305 = vmatpush3.bf16.xpose.msra.mxu1 %v1522_v24  ;;  %3306 = vmatprep.mubr.msk.bf16.mxu1 %vm3710_vm1, %v3709_v11 }
 0x69a   : > { %3316 = vmatprep.subr.bf16.mxu1 %v3709_v11 }
 0x6a0   : > { %3307 = vmatmul.mubr.msk.bf16.vlgmr.msra.gmra.mrb[32].mxu1 %vm566_vm2, %v1515_v36 }
 0x6a1   : > { %3320 = vmatprep.mubr.msk.bf16.mxu1 %vm3710_vm1, %v3709_v11 }
 0x74c   : > { %v4077_v37 = vpop.f32.mrb[16].mxu1 }
 0x74d   : > { %v3258_v38 = vpop.f32.mrb[17].mxu1 }
 0x74e   : > { %v1078_v39 = vpop.f32.mrb[18].mxu1 }
 0x74f   : > { %v3259_v40 = vpop.f32.mrb[19].mxu1 }
 0x75b   : > { %v1228_v41 = vpop.f32.mrb[20].mxu1 }
 0x75c   : > { %v3272_v42 = vpop.f32.mrb[21].mxu1  ;;  %v1234_v43 = vsel %vm566_vm2, %v1228_v41, -inf }
 0x75d   : > { %1235 = vmax.xlane.f32.xlu0 %v1234_v43  ;;  %v1231_v44 = vpop.f32.mrb[22].mxu1 }
 0x75e   : > { %v3273_v45 = vpop.f32.mrb[23].mxu1 }
 0x763   : > { %v1338_v46 = vpop.f32.mrb[24].mxu1 }
 0x764   : > { %v3284_v48 = vpop.f32.mrb[25].mxu1  ;;  %v1344_v49 = vsel %vm566_vm2, %v1338_v46, -inf }
 0x765   : > { %1345 = vmax.xlane.f32.xlu1 %v1344_v49  ;;  %v1341_v50 = vpop.f32.mrb[26].mxu1 }
 0x766   : > { %v3285_v51 = vpop.f32.mrb[27].mxu1 }
 0x769   : > { %1717 = vadd.xlane.f32.xlu1 %v1716_v52 }
 0x76b   : > { %v1448_v53 = vpop.f32.mrb[28].mxu1 }
 0x76c   : > { %v3296_v54 = vpop.f32.mrb[29].mxu1  ;;  %v1454_v55 = vsel %vm566_vm2, %v1448_v53, -inf }
 0x76d   : > { %1455 = vmax.xlane.f32.xlu0 %v1454_v55  ;;  %v1451_v56 = vpop.f32.mrb[30].mxu1  ;;  %v3019_v54 = vld [vmem:[%s4442_s1 + $0x2] ss:$0 sm:$0xff] }
 0x76e   : > { %v3297_v57 = vpop.f32.mrb[31].mxu1  ;;  %v3526_v56 = vld [vmem:[%s4444_s3 + $0x20] sm:$0xff]  }
 0x773   : > { %v1558_v58 = vpop.f32.mrb[32].mxu1 }
 0x774   : > { %v3308_v59 = vpop.f32.mrb[33].mxu1  ;;  %v1564_v60 = vsel %vm566_vm2, %v1558_v58, -inf }
 0x775   : > { %1565 = vmax.xlane.f32.xlu0 %v1564_v60  ;;  %v1561_v61 = vpop.f32.mrb[34].mxu1  ;;  %v3020_v59 = vld [vmem:[%s4443_s2 + $0x2] ss:$0 sm:$0xff]  ;;  %v3527_v60 = vld [vmem:[%s4444_s3 + $0x28] sm:$0xff]  }
 0x776   : > { %v3309_v62 = vpop.f32.mrb[35].mxu1 }
 0x77a   : > { %1246 = vrot.lane.b32.xlu1 %v4034_v15, %s4514_s15 }
 0x7ea   : > { %v1236_v63 = vpop.xlane.xlu0 %1235 }
 0x7eb   : > { %v1237_v0 = vsub.f32 %v1228_v41, %v1236_v63 }
 0x7ed   : > { %v1238_v1 = vmul.f32 1.442695, %v1237_v0 }
 0x7ef   : > { %3570 = vpow2.f32 %v1238_v1 }
 0x7f2   : > { %v1346_v2 = vpop.xlane.xlu1 %1345 }
 0x7f3   : > { %v1347_v3 = vsub.f32 %v1338_v46, %v1346_v2 }
 0x7f5   : > { %v1348_v4 = vmul.f32 1.442695, %v1347_v3  ;;  %v3528_v3 = vld [vmem:[%s4445_s4 + $0x10] sm:$0xff]  }
 0x7f6   : > { %v1718_v5 = vpop.xlane.xlu1 %1717  ;;  %3317 = vmatpush3.bf16.msra.mxu1 %v3528_v3 }
 0x7f7   : > { %3572 = vpow2.f32 %v1348_v4  ;;  %v1719_v6 = vmul.f32 0.03125, %v1718_v5  ;;  %3318 = vmatprep.subr.bf16.mxu1 %v3709_v11 }
 0x7f9   : > { %v4091_v7 = vsub.f32 %v4081_v47, %v1719_v6  ;;  %v3571_v17 = vpop.eup %3570 }
 0x7fa   : > { %v1456_v8 = vpop.xlane.xlu0 %1455  ;;  %v1247_v9 = vpop.permute.xlu1 %1246  ;;  %v1240_v19 = vsel %vm566_vm2, %v3571_v17, 0.0 }
 0x7fb   : > { %v1457_v10 = vsub.f32 %v1448_v53, %v1456_v8  ;;  %v1252_v12 = vsel %vm630_vm3, %v1247_v9, 0  ;;  %v1721_v13 = vmul.f32 %v4091_v7, %v4091_v7 }
 0x7fc   : > { %3275 = vmatpush3.bf16.msra.mxu0 %v1252_v12 }
 0x7fd   : > { %v1458_v14 = vmul.f32 1.442695, %v1457_v10  ;;  %v1722_v16 = vsel %vm473_vm0, %v1721_v13, 0.0  ;;  %3286 = vmatprep.subr.bf16.mxu0 %v3709_v11  ;;  %v3529_v13 = vld [vmem:[%s4445_s4 + $0x18] sm:$0xff]  }
 0x7fe   : > { %1723 = vadd.xlane.f32.xlu0 %v1722_v16  ;;  %3319 = vmatpush3.bf16.msra.mxu1 %v3529_v13 }
 0x7ff   : > { %3574 = vpow2.f32 %v1458_v14  ;;  %3332 = vmatprep.subr.bf16.mxu1 %v3709_v11 }
 0x801   : > { %v3573_v18 = vpop.eup %3572 }
 0x802   : > { %1241 = vadd.xlane.f32.xlu0 %v1240_v19  ;;  %v1350_v20 = vsel %vm566_vm2, %v3573_v18, 0.0  ;;  %v1566_v23 = vpop.xlane.xlu0 %1565 }
 0x803   : > { %1351 = vadd.xlane.f32.xlu1 %v1350_v20  ;;  %v1567_v25 = vsub.f32 %v1558_v58, %v1566_v23 }
 0x805   : > { %v1568_v26 = vmul.f32 1.442695, %v1567_v25 }
 0x807   : > { %3576 = vpow2.f32 %v1568_v26 }
 0x809   : > { %v3575_v21 = vpop.eup %3574 }
 0x80a   : > { %v1460_v22 = vsel %vm566_vm2, %v3575_v21, 0.0 }
 0x80b   : > { %1461 = vadd.xlane.f32.xlu0 %v1460_v22 }
 0x811   : > { %v3577_v27 = vpop.eup %3576 }
 0x812   : > { %v1570_v28 = vsel %vm566_vm2, %v3577_v27, 0.0 }
 0x814   : > { %1466 = vrot.lane.b32.xlu1 %v4034_v15, %s4515_s20 }
 0x821   : > { %1356 = vrot.lane.b32.xlu0 %v4034_v15, %s4516_s18 }
 0x838   : > { %1571 = vadd.xlane.f32.xlu1 %v1570_v28 }
 0x849   : > { %1576 = vrot.lane.b32.xlu1 %v4034_v15, %s4517_s16 }
 0x88b   : > { %v1724_v29 = vpop.xlane.xlu0 %1723 }
 0x88c   : > { %v1725_v45 = vmul.f32 0.03125, %v1724_v29 }
 0x88e   : > { %v1726_v46 = vadd.f32 1e-05, %v1725_v45 }
 0x88f   : > { %v1242_v30 = vpop.xlane.xlu0 %1241 }
 0x890   : > { %3578 = vrcp.f32 %v1242_v30  ;;  %v1352_v31 = vpop.xlane.xlu1 %1351 }
 0x891   : > { %3580 = vrcp.f32 %v1352_v31 }
 0x894   : > { %v1467_v39 = vpop.permute.xlu1 %1466 }
 0x895   : > { %v1472_v42 = vsel %vm630_vm3, %v1467_v39, 0 }
 0x898   : > { %v1462_v32 = vpop.xlane.xlu0 %1461 }
 0x899   : > { %3582 = vrcp.f32 %v1462_v32 }
 0x89a   : > { %v3579_v33 = vpop.eup %3578  ;;  %3584 = vrsqrt.f32 %v1726_v46 }
 0x89b   : > { %v1244_v34 = vmul.f32 %v3579_v33, %v3571_v17  ;;  %v3581_v38 = vpop.eup %3580 }
 0x89c   : > { %v1357_v35 = vpop.permute.xlu0 %1356  ;;  %v1354_v15 = vmul.f32 %v3581_v38, %v3573_v18 }
 0x89d   : > { %v1362_v24 = vsel %vm630_vm3, %v1357_v35, 0  ;;  %v1245_v36 = vpack.c.bf16 %v1244_v34, %v1244_v34 }
 0x89e   : > { %v1355_v40 = vpack.c.bf16 %v1354_v15, %v1354_v15 }
 0x89f   : > { %3277 = vmatmul.mubr.msk.bf16.vlgmr.msra.gmra.mrb[24].mxu0 %vm566_vm2, %v1245_v36 }
 0x8a0   : > { %3287 = vmatpush3.bf16.msra.mxu0 %v1362_v24  ;;  %3288 = vmatprep.mubr.msk.bf16.mxu0 %vm3710_vm1, %v3709_v11 }
 0x8a1   : > { %3298 = vmatprep.subr.bf16.mxu0 %v3709_v11 }
 0x8a3   : > { %v3583_v41 = vpop.eup %3582 }
 0x8a4   : > { %v1464_v43 = vmul.f32 %v3583_v41, %v3575_v21  ;;  %v3585_v51 = vpop.eup %3584 }
 0x8a5   : > { %v1728_v52 = vmul.f32 %v3585_v51, %v4091_v7 }
 0x8a6   : > { %v1465_v44 = vpack.c.bf16 %v1464_v43, %v1464_v43 }
 0x8a7   : > { %3289 = vmatmul.mubr.msk.bf16.vlgmr.msra.gmra.mrb[28].mxu0 %vm566_vm2, %v1355_v40  ;;  %v1735_v58 = vmul.f32 %v3019_v54, %v1728_v52 }
 0x8a8   : > { %3299 = vmatpush3.bf16.msra.mxu0 %v1472_v42  ;;  %3300 = vmatprep.mubr.msk.bf16.mxu0 %vm3710_vm1, %v3709_v11 }
 0x8a9   : > { %3310 = vmatprep.subr.bf16.mxu0 %v3709_v11  ;;  %v1742_v61 = vadd.f32 %v3020_v59, %v1735_v58 }
 0x8ab   : > { %v1743_v62 = vpack.c.bf16 %v1742_v61, %v1742_v61 }
 0x8af   : > { %3301 = vmatmul.mubr.msk.bf16.vlgmr.msra.gmra.mrb[32].mxu0 %vm566_vm2, %v1465_v44 }
 0x8b0   : > { %3312 = vmatprep.mubr.msk.bf16.mxu0 %vm3710_vm1, %v3709_v11 }
 0x8c5   : > { %v1572_v48 = vpop.xlane.xlu1 %1571 }
 0x8c6   : > { %3586 = vrcp.f32 %v1572_v48 }
 0x8c9   : > { %v1577_v49 = vpop.permute.xlu1 %1576 }
 0x8ca   : > { %v1582_v50 = vsel %vm630_vm3, %v1577_v49, 0 }
 0x8cb   : > { %3311 = vmatpush3.bf16.msra.mxu0 %v1582_v50 }
 0x8cc   : > { %3324 = vmatprep.subr.bf16.mxu0 %v3709_v11 }
 0x8d0   : > { %v3587_v53 = vpop.eup %3586 }
 0x8d1   : > { %v1574_v55 = vmul.f32 %v3587_v53, %v3577_v27 }
 0x8d3   : > { %v1575_v57 = vpack.c.bf16 %v1574_v55, %v1574_v55 }
 0x8d5   : > { %3313 = vmatmul.mubr.msk.bf16.vlgmr.msra.gmra.mrb[36].mxu0 %vm566_vm2, %v1575_v57 }
 0x8d6   : > { %3325 = vmatpush3.bf16.msra.mxu0 %v3526_v56  ;;  %3328 = vmatprep.mubr.msk.bf16.mxu0 %vm3710_vm1, %v3709_v11 }
 0x8d7   : > { %3326 = vmatprep.subr.bf16.mxu0 %v3709_v11 }
 0x8da   : > { %3327 = vmatpush3.bf16.msra.mxu0 %v3527_v60 }
 0x8db   : > { %3338 = vmatprep.subr.bf16.mxu0 %v3709_v11 }
 0x8dd   : > { %3329 = vmatmul.mubr.msk.bf16.vlgmr.msra.gmra.mrb[40].mxu0 %vm473_vm0, %v1743_v62 }
 0x8de   : > { %3340 = vmatprep.mubr.msk.bf16.mxu0 %vm3710_vm1, %v3709_v11 }
 0x972   : > { %v1288_v63 = vpop.f32.mrb[24].mxu0 }
 0x973   : > { %v3278_v0 = vpop.f32.mrb[25].mxu0 }
 0x974   : > { %v1291_v1 = vpop.f32.mrb[26].mxu0 }
 0x975   : > { %v3279_v2 = vpop.f32.mrb[27].mxu0 }
 0x97a   : > { %v1398_v4 = vpop.f32.mrb[28].mxu0 }
 0x97b   : > { %1625 = vrot.lane.b32.xlu0 %v1398_v4, %s4518_s12  ;;  %v3290_v5 = vpop.f32.mrb[29].mxu0 }
 0x97c   : > { %v1401_v6 = vpop.f32.mrb[30].mxu0 }
 0x97d   : > { %v3291_v7 = vpop.f32.mrb[31].mxu0 }
 0x982   : > { %v1508_v8 = vpop.f32.mrb[32].mxu0 }
 0x983   : > { %1629 = vrot.lane.b32.xlu1 %v1508_v8, %s4519_s23  ;;  %v3302_v9 = vpop.f32.mrb[33].mxu0 }
 0x984   : > { %v1511_v10 = vpop.f32.mrb[34].mxu0 }
 0x985   : > { %v3303_v12 = vpop.f32.mrb[35].mxu0 }
 0x9a8   : > { %v1618_v14 = vpop.f32.mrb[36].mxu0 }
 0x9a9   : > { %1633 = vrot.lane.b32.xlu0 %v1618_v14, %s4520_s29  ;;  %v3314_v16 = vpop.f32.mrb[37].mxu0 }
 0x9aa   : > { %v1621_v17 = vpop.f32.mrb[38].mxu0 }
 0x9ab   : > { %v3315_v18 = vpop.f32.mrb[39].mxu0 }
 0x9b0   : > { %v1798_v19 = vpop.f32.mrb[40].mxu0 }
 0x9b1   : > { %v4155_v20 = vpack.c.bf16 %v1798_v19, %v1798_v19  ;;  %v3330_v21 = vpop.f32.mrb[41].mxu0 }
 0x9b2   : > { %v1801_v22 = vpop.f32.mrb[42].mxu0 }
 0x9b3   : > { %1916 = vrot.lane.b32.xlu0 %v4155_v20, %s4521_s28  ;;  %1806 = vrot.lane.b32.xlu1 %v4155_v20, %s4522_s0  ;;  %v3331_v23 = vpop.f32.mrb[43].mxu0 }
 0x9b7   : > { %2026 = vrot.lane.b32.xlu0 %v4155_v20, %s4523_s8  ;;  %1914 = vrot.lane.b32.xlu1 %v4155_v20, %s4510_s17  ;;  %s3725_s8 = smov [#allocation6]  }
 0x9bb   : > { %2136 = vrot.lane.b32.xlu0 %v4155_v20, %s4511_s13  ;;  %2024 = vrot.lane.b32.xlu1 %v4155_v20, %s4512_s19  ;;  %s468_s13 = scalar_lea.vmem [#allocation6], %s3890_s30 }
 0x9bc   : > { %s2883_s19 = sshll.u32 %s468_s13, 4  ;;  %s4387_s19 = int_to_ptr.vmem [resolvable:$true] %s2883_s19 }
 0x9bd   : > { %s3638_s0 = scalar_lea.vmem %s4387_s19, 384 }
 0x9be   : > { %p3639_p11 = scmp.ne.s32.totalorder %s4387_s19, %s3638_s0 }
 0x9bf   : > { %2134 = vrot.lane.b32.xlu1 %v4155_v20, %s4513_s27  ;;  %s3103_s27 = sshll.u32 %s3814_s25, 7  ;;  %s4526_s25 = sand.u32 1, %s3696_s22  }
 0x9c0   : > { %s4398_s28 = scalar_lea.sflag [#allocation5], %s4526_s25  ;;  %p3640_p0 = pnand %p3639_p11, %p4527_p12 }
 0x9c2   : > { %p3641_p3 = pneg %p3640_p0 }
 0x9ed   : > { %v1626_v25 = vpop.permute.xlu0 %1625 }
 0x9ee   : > { %v1636_v27 = vsel %vm566_vm2, %v1288_v63, %v1626_v25 }
 0x9f5   : > { %v1630_v26 = vpop.permute.xlu1 %1629 }
 0x9f6   : > { %v1637_v28 = vsel %vm1017_vm4, %v1636_v27, %v1630_v26 }
 0xa1b   : > { %v1634_v29 = vpop.permute.xlu0 %1633 }
 0xa1c   : > { %v1638_v30 = vsel %vm1019_vm5, %v1637_v28, %v1634_v29 }
 0xa1d   : > { %v1639_v31 = vpack.c.bf16 %v1638_v30, %v1638_v30 }
 0xa1f   : > { %3321 = vmatmul.mubr.msk.bf16.vlgmr.msra.gmra.mrb[36].mxu1 %vm473_vm0, %v1639_v31 }
 0xa20   : > { %3334 = vmatprep.mubr.msk.bf16.mxu1 %vm3710_vm1, %v3709_v11 }
 0xa25   : > { %v1807_v32 = vpop.permute.xlu1 %1806  ;;  %v1917_v34 = vpop.permute.xlu0 %1916 }
 0xa26   : > { %v1812_v33 = vsel %vm566_vm2, %v1807_v32, 0  ;;  %v1922_v35 = vsel %vm566_vm2, %v1917_v34, 0 }
 0xa27   : > { %3333 = vmatpush3.bf16.xpose.msra.mxu1 %v1812_v33 }
 0xa28   : > { %3344 = vmatprep.subr.bf16.mxu1 %v3709_v11 }
 0xa29   : > { %v2027_v24 = vpop.permute.xlu0 %2026  ;;  %v1915_v36 = vpop.permute.xlu1 %1914 }
 0xa2a   : > { %v2032_v38 = vsel %vm566_vm2, %v2027_v24, 0 }
 0xa2d   : > { %v2137_v15 = vpop.permute.xlu0 %2136  ;;  %v2025_v39 = vpop.permute.xlu1 %2024 }
 0xa2e   : > { %3335 = vmatmul.mubr.msk.bf16.vlgmr.msra.gmra.mrb[40].mxu1 %vm566_vm2, %v4155_v20  ;;  %v2142_v40 = vsel %vm566_vm2, %v2137_v15, 0 }
 0xa2f   : > { %3345 = vmatpush3.bf16.xpose.msra.mxu1 %v1922_v35  ;;  %3346 = vmatprep.mubr.msk.bf16.mxu1 %vm3710_vm1, %v3709_v11 }
 0xa30   : > { %3356 = vmatprep.subr.bf16.mxu1 %v3709_v11 }
 0xa31   : > { %v2135_v41 = vpop.permute.xlu1 %2134 }
 0xa36   : > { %3347 = vmatmul.mubr.msk.bf16.vlgmr.msra.gmra.mrb[44].mxu1 %vm566_vm2, %v1915_v36 }
 0xa37   : > { %3357 = vmatpush3.bf16.xpose.msra.mxu1 %v2032_v38  ;;  %3358 = vmatprep.mubr.msk.bf16.mxu1 %vm3710_vm1, %v3709_v11 }
 0xa38   : > { %3368 = vmatprep.subr.bf16.mxu1 %v3709_v11 }
 0xa3e   : > { %3359 = vmatmul.mubr.msk.bf16.vlgmr.msra.gmra.mrb[48].mxu1 %vm566_vm2, %v2025_v39 }
 0xa3f   : > { %3369 = vmatpush3.bf16.xpose.msra.mxu1 %v2142_v40  ;;  %3370 = vmatprep.mubr.msk.bf16.mxu1 %vm3710_vm1, %v3709_v11 }
 0xa40   : > { %3380 = vmatprep.subr.bf16.mxu1 %v3709_v11 }
 0xa46   : > { %3371 = vmatmul.mubr.msk.bf16.vlgmr.msra.gmra.mrb[52].mxu1 %vm566_vm2, %v2135_v41 }
 0xa47   : > { %3384 = vmatprep.mubr.msk.bf16.mxu1 %vm3710_vm1, %v3709_v11 }
 0xaf2   : > { %v4198_v42 = vpop.f32.mrb[36].mxu1 }
 0xaf3   : > { %v3322_v43 = vpop.f32.mrb[37].mxu1 }
 0xaf4   : > { %v1697_v44 = vpop.f32.mrb[38].mxu1 }
 0xaf5   : > { %v3323_v45 = vpop.f32.mrb[39].mxu1 }
 0xb01   : > { %v1848_v46 = vpop.f32.mrb[40].mxu1 }
 0xb02   : > { %v3336_v48 = vpop.f32.mrb[41].mxu1  ;;  %v1854_v49 = vsel %vm566_vm2, %v1848_v46, -inf }
 0xb03   : > { %1855 = vmax.xlane.f32.xlu0 %v1854_v49  ;;  %v1851_v50 = vpop.f32.mrb[42].mxu1 }
 0xb04   : > { %v3337_v51 = vpop.f32.mrb[43].mxu1 }
 0xb09   : > { %v1958_v52 = vpop.f32.mrb[44].mxu1 }
 0xb0a   : > { %v3348_v53 = vpop.f32.mrb[45].mxu1  ;;  %v1964_v54 = vsel %vm566_vm2, %v1958_v52, -inf }
 0xb0b   : > { %1965 = vmax.xlane.f32.xlu1 %v1964_v54  ;;  %v1961_v55 = vpop.f32.mrb[46].mxu1 }
 0xb0c   : > { %v3349_v56 = vpop.f32.mrb[47].mxu1 }
 0xb11   : > { %v2068_v57 = vpop.f32.mrb[48].mxu1 }
 0xb12   : > { %v3360_v58 = vpop.f32.mrb[49].mxu1  ;;  %v2074_v59 = vsel %vm566_vm2, %v2068_v57, -inf }
 0xb13   : > { %2075 = vmax.xlane.f32.xlu0 %v2074_v59  ;;  %v2071_v60 = vpop.f32.mrb[50].mxu1  ;;  %v3530_v59 = vld [vmem:[%s4445_s4 + $0x20] sm:$0xff]  }
 0xb14   : > { %v3361_v61 = vpop.f32.mrb[51].mxu1  ;;  %3381 = vmatpush3.bf16.msra.mxu1 %v3530_v59  ;;  %v3531_v60 = vld [vmem:[%s4445_s4 + $0x28] sm:$0xff]   ;;  %v3045_v59 = vld [vmem:[%s4447_s6] ss:$0 sm:$0xff] }
 0xb15   : > { %3382 = vmatprep.subr.bf16.mxu1 %v3709_v11 }
 0xb18   : > { %3383 = vmatpush3.bf16.msra.mxu1 %v3531_v60 }
 0xb19   : > { %v2178_v62 = vpop.f32.mrb[52].mxu1  ;;  %3396 = vmatprep.subr.bf16.mxu1 %v3709_v11 }
 0xb1a   : > { %v3372_v63 = vpop.f32.mrb[53].mxu1  ;;  %v2184_v0 = vsel %vm566_vm2, %v2178_v62, -inf }
 0xb1b   : > { %2185 = vmax.xlane.f32.xlu0 %v2184_v0  ;;  %v2181_v1 = vpop.f32.mrb[54].mxu1 }
 0xb1c   : > { %v3373_v2 = vpop.f32.mrb[55].mxu1 }
 0xb90   : > { %v1856_v3 = vpop.xlane.xlu0 %1855 }
 0xb91   : > { %v1857_v4 = vsub.f32 %v1848_v46, %v1856_v3 }
 0xb93   : > { %v1858_v5 = vmul.f32 1.442695, %v1857_v4 }
 0xb95   : > { %3588 = vpow2.f32 %v1858_v5  ;;  %v3608_v5 = vld [vmem:[%s3893_s21] sm:$0xff] }
 0xb98   : > { %v1966_v6 = vpop.xlane.xlu1 %1965 }
 0xb99   : > { %v1967_v7 = vsub.f32 %v1958_v52, %v1966_v6  ;;  %v1081_v6 = vadd.f32 %v3608_v5, %v4077_v37 }
 0xb9b   : > { %v1968_v8 = vmul.f32 1.442695, %v1967_v7  ;;  %v2986_v7 = vld [vmem:[%s4446_s5] ss:$0 sm:$0xff] }
 0xb9d   : > { %3590 = vpow2.f32 %v1968_v8  ;;  %v3609_v8 = vld [vmem:[%s3893_s21 + $0x8] sm:$0xff] }
 0xb9f   : > { %v3589_v9 = vpop.eup %3588 }
 0xba0   : > { %v1860_v10 = vsel %vm566_vm2, %v3589_v9, 0.0  ;;  %v2076_v12 = vpop.xlane.xlu0 %2075 }
 0xba1   : > { %1861 = vadd.xlane.f32.xlu1 %v1860_v10  ;;  %v2077_v22 = vsub.f32 %v2068_v57, %v2076_v12  ;;  %v4254_v10 = vadd.f32 %v2986_v7, %v1081_v6  ;;  %v3015_v12 = vld [vmem:[%s4446_s5 + $0x1] ss:$0 sm:$0xff]  ;;  %v3536_v6 = vld [vmem:[#allocation3 + $0x20] sm:$0xff]  }
 0xba3   : > { %v2078_v23 = vmul.f32 1.442695, %v2077_v22 }
 0xba7   : > { %v3591_v13 = vpop.eup %3590 }
 0xba8   : > { %v2186_v14 = vpop.xlane.xlu0 %2185  ;;  %v1970_v16 = vsel %vm566_vm2, %v3591_v13, 0.0 }
 0xba9   : > { %v2187_v17 = vsub.f32 %v2178_v62, %v2186_v14  ;;  %1971 = vadd.xlane.f32.xlu0 %v1970_v16  ;;  %v2330_v14 = vsel %vm473_vm0, %v4254_v10, 0.0 }
 0xbab   : > { %v2188_v18 = vmul.f32 1.442695, %v2187_v17 }
 0xbad   : > { %3592 = vpow2.f32 %v2188_v18 }
 0xbae   : > { %3594 = vpow2.f32 %v2078_v23 }
 0xbb2   : > { %1866 = vrot.lane.b32.xlu1 %v4155_v20, %s4514_s15 }
 0xbb7   : > { %v3593_v19 = vpop.eup %3592 }
 0xbb8   : > { %v2190_v21 = vsel %vm566_vm2, %v3593_v19, 0.0  ;;  %v3595_v25 = vpop.eup %3594 }
 0xbb9   : > { %2191 = vadd.xlane.f32.xlu0 %v2190_v21  ;;  %v2080_v26 = vsel %vm566_vm2, %v3595_v25, 0.0 }
 0xbcf   : > { %1976 = vrot.lane.b32.xlu0 %v4155_v20, %s4516_s18  ;;  %s3642_s18 = sshll.u32 %s3725_s8, 4  ;;  %s3643_s18 = int_to_ptr.vmem [resolvable:$false] %s3642_s18 }
 0xbd0   : > { %p3645_p4 = scmp.lt.s32.totalorder %s4387_s19, %s3643_s18 }
 0xbd6   : > { %2081 = vadd.xlane.f32.xlu1 %v2080_v26 }
 0xbe7   : > { %2086 = vrot.lane.b32.xlu1 %v4155_v20, %s4515_s20 }
 0xbeb   : > { %2196 = vrot.lane.b32.xlu1 %v4155_v20, %s4517_s16  ;;  %s3644_s16 = scalar_lea.vmem %s3643_s18, 768 }
 0xbec   : > { %p3646_p7 = scmp.lt.s32.totalorder %s3644_s16, %s3638_s0 }
 0xbee   : > { %p3647_p8 = por %p3646_p7, %p3645_p4 }
 0xbf0   : > { %p3648_p9 = pnand %p3647_p8, %p3641_p3 }
 0xc2e   : > { %v1862_v27 = vpop.xlane.xlu1 %1861 }
 0xc2f   : > { %3596 = vrcp.f32 %v1862_v27 }
 0xc32   : > { %v1867_v28 = vpop.permute.xlu1 %1866 }
 0xc33   : > { %v1872_v29 = vsel %vm630_vm3, %v1867_v28, 0 }
 0xc34   : > { %3339 = vmatpush3.bf16.msra.mxu0 %v1872_v29 }
 0xc35   : > { %3350 = vmatprep.subr.bf16.mxu0 %v3709_v11 }
 0xc36   : > { %v1972_v31 = vpop.xlane.xlu0 %1971 }
 0xc37   : > { %3598 = vrcp.f32 %v1972_v31 }
 0xc39   : > { %v3597_v30 = vpop.eup %3596 }
 0xc3a   : > { %v1864_v32 = vmul.f32 %v3597_v30, %v3589_v9  ;;  %v1700_v9 = vadd.f32 %v3609_v8, %v4198_v42 }
 0xc3c   : > { %v1865_v33 = vpack.c.bf16 %v1864_v32, %v1864_v32 }
 0xc3e   : > { %3341 = vmatmul.mubr.msk.bf16.vlgmr.msra.gmra.mrb[44].mxu0 %vm566_vm2, %v1865_v33 }
 0xc3f   : > { %3352 = vmatprep.mubr.msk.bf16.mxu0 %vm3710_vm1, %v3709_v11 }
 0xc41   : > { %v3599_v34 = vpop.eup %3598 }
 0xc42   : > { %v1974_v35 = vmul.f32 %v3599_v34, %v3591_v13  ;;  %v4259_v13 = vadd.f32 %v3015_v12, %v1700_v9  ;;  %v3060_v12 = vld [vmem:[%s4448_s7 + $0x2] ss:$0 sm:$0xff] }
 0xc44   : > { %v1975_v38 = vpack.c.bf16 %v1974_v35, %v1974_v35  ;;  %v2333_v37 = vsel %vm473_vm0, %v4259_v13, 0.0 }
 0xc46   : > { %v2192_v20 = vpop.xlane.xlu0 %2191 }
 0xc4a   : > { %v1977_v24 = vpop.permute.xlu0 %1976 }
 0xc4b   : > { %v1982_v36 = vsel %vm630_vm3, %v1977_v24, 0 }
 0xc4c   : > { %3351 = vmatpush3.bf16.msra.mxu0 %v1982_v36 }
 0xc4d   : > { %3362 = vmatprep.subr.bf16.mxu0 %v3709_v11 }
 0xc4f   : > { %3353 = vmatmul.mubr.msk.bf16.vlgmr.msra.gmra.mrb[48].mxu0 %vm566_vm2, %v1975_v38 }
 0xc50   : > { %3364 = vmatprep.mubr.msk.bf16.mxu0 %vm3710_vm1, %v3709_v11 }
 0xc63   : > { %v2082_v15 = vpop.xlane.xlu1 %2081 }
 0xc64   : > { %3600 = vrcp.f32 %v2082_v15 }
 0xc65   : > { %3602 = vrcp.f32 %v2192_v20 }
 0xc67   : > { %v2087_v39 = vpop.permute.xlu1 %2086 }
 0xc68   : > { %v2092_v40 = vsel %vm630_vm3, %v2087_v39, 0 }
 0xc69   : > { %3363 = vmatpush3.bf16.msra.mxu0 %v2092_v40 }
 0xc6a   : > { %3374 = vmatprep.subr.bf16.mxu0 %v3709_v11 }
 0xc6b   : > { %v2197_v44 = vpop.permute.xlu1 %2196 }
 0xc6c   : > { %v2202_v48 = vsel %vm630_vm3, %v2197_v44, 0 }
 0xc6e   : > { %v3601_v41 = vpop.eup %3600 }
 0xc6f   : > { %v2084_v43 = vmul.f32 %v3601_v41, %v3595_v25  ;;  %v3603_v46 = vpop.eup %3602  ;;  %v3044_v25 = vld [vmem:[%s4446_s5 + $0x2] ss:$0 sm:$0xff] }
 0xc70   : > { %v2194_v49 = vmul.f32 %v3603_v46, %v3593_v19  ;;  %v3533_v46 = vld [vmem:[#allocation3] sm:$0xff]  }
 0xc71   : > { %v2085_v45 = vpack.c.bf16 %v2084_v43, %v2084_v43 }
 0xc72   : > { %v2195_v50 = vpack.c.bf16 %v2194_v49, %v2194_v49  ;;  %v3535_v49 = vld [vmem:[#allocation3 + $0x8] sm:$0xff]  }
 0xc73   : > { %3365 = vmatmul.mubr.msk.bf16.vlgmr.msra.gmra.mrb[52].mxu0 %vm566_vm2, %v2085_v45  ;;  %v3532_v45 = vld [vmem:[#allocation3 + $0x10] sm:$0xff]  }
 0xc74   : > { %3375 = vmatpush3.bf16.msra.mxu0 %v2202_v48  ;;  %3376 = vmatprep.mubr.msk.bf16.mxu0 %vm3710_vm1, %v3709_v11  ;;  %v3534_v48 = vld [vmem:[#allocation3 + $0x18] sm:$0xff]  }
 0xc75   : > { %3388 = vmatprep.subr.bf16.mxu0 %v3709_v11 }
 0xc7b   : > { %3377 = vmatmul.mubr.msk.bf16.vlgmr.msra.gmra.mrb[56].mxu0 %vm566_vm2, %v2195_v50 }
 0xc7c   : > { %3392 = vmatprep.mubr.msk.bf16.mxu0 %vm3710_vm1, %v3709_v11  ;;  %3389 = vmatpush3.bf16.msra.mxu0 %v3532_v45 }
 0xc7d   : > { %3390 = vmatprep.subr.bf16.mxu0 %v3709_v11 }
 0xc80   : > { %3391 = vmatpush3.bf16.msra.mxu0 %v3534_v48 }
 0xc81   : > { %3404 = vmatprep.subr.bf16.mxu0 %v3709_v11 }
 0xd11   : > { %v1908_v51 = vpop.f32.mrb[44].mxu0 }
 0xd12   : > { %v3342_v52 = vpop.f32.mrb[45].mxu0 }
 0xd13   : > { %v1911_v53 = vpop.f32.mrb[46].mxu0 }
 0xd14   : > { %v3343_v54 = vpop.f32.mrb[47].mxu0 }
 0xd22   : > { %v2018_v55 = vpop.f32.mrb[48].mxu0 }
 0xd23   : > { %2245 = vrot.lane.b32.xlu0 %v2018_v55, %s4518_s12  ;;  %v3354_v56 = vpop.f32.mrb[49].mxu0 }
 0xd24   : > { %v2021_v57 = vpop.f32.mrb[50].mxu0 }
 0xd25   : > { %v3355_v58 = vpop.f32.mrb[51].mxu0 }
 0xd26   : > { %v3048_v58 = vld [vmem:[%s4447_s6 + $0x1] ss:$0 sm:$0xff] }
 0xd46   : > { %v2128_v61 = vpop.f32.mrb[52].mxu0 }
 0xd47   : > { %2249 = vrot.lane.b32.xlu1 %v2128_v61, %s4519_s23  ;;  %v3366_v62 = vpop.f32.mrb[53].mxu0 }
 0xd48   : > { %v2131_v63 = vpop.f32.mrb[54].mxu0  ;;  %v3050_v62 = vld [vmem:[%s4448_s7 + $0x1] ss:$0 sm:$0xff] }
 0xd49   : > { %v3367_v0 = vpop.f32.mrb[55].mxu0  ;;  %v3046_v63 = vld [vmem:[%s4448_s7] ss:$0 sm:$0xff] }
 0xd4e   : > { %v2238_v1 = vpop.f32.mrb[56].mxu0 }
 0xd4f   : > { %2253 = vrot.lane.b32.xlu0 %v2238_v1, %s4520_s29  ;;  %v3378_v2 = vpop.f32.mrb[57].mxu0  ;;  %s4393_s29 = scalar_lea.hbm %s4524_s24, %s3103_s27 }
 0xd50   : > { %v2241_v3 = vpop.f32.mrb[58].mxu0 }
 0xd51   : > { %v3379_v4 = vpop.f32.mrb[59].mxu0  ;;  %v3058_v3 = vld [vmem:[%s4447_s6 + $0x2] ss:$0 sm:$0xff] }
 0xd6b   : > { %2331 = vadd.xlane.f32.xlu1 %v2330_v14  ;;  %v3537_v14 = vld [vmem:[#allocation3 + $0x28] sm:$0xff]  }
 0xd6e   : > { %2334 = vadd.xlane.f32.xlu0 %v2333_v37 }
 0xd95   : > { %v2246_v16 = vpop.permute.xlu0 %2245 }
 0xd96   : > { %v2256_v42 = vsel %vm566_vm2, %v1908_v51, %v2246_v16 }
 0xdb9   : > { %v2250_v17 = vpop.permute.xlu1 %2249 }
 0xdba   : > { %v2257_v18 = vsel %vm1017_vm4, %v2256_v42, %v2250_v17  ;;  %v3538_v17 = vld [vmem:[%s4451_s10] sm:$0xff]  }
 0xdbb   : > { %v3539_v42 = vld [vmem:[%s4451_s10 + $0x20] sm:$0xff]  }
 0xdc1   : > { %v2254_v19 = vpop.permute.xlu0 %2253 }
 0xdc2   : > { %v2258_v21 = vsel %vm1019_vm5, %v2257_v18, %v2254_v19  ;;  %v3540_v18 = vld [vmem:[%s4451_s10 + $0x8] sm:$0xff]  }
 0xdc3   : > { %v2259_v22 = vpack.c.bf16 %v2258_v21, %v2258_v21  ;;  %v3541_v19 = vld [vmem:[%s4451_s10 + $0x28] sm:$0xff]   ;;  %v3542_v21 = vld [vmem:[%s4451_s10 + $0x10] sm:$0xff]  }
 0xdc5   : > { %3385 = vmatmul.mubr.msk.bf16.vlgmr.msra.gmra.mrb[56].mxu1 %vm473_vm0, %v2259_v22  ;;  %v3543_v22 = vld [vmem:[%s4451_s10 + $0x30] sm:$0xff]  }
 0xdc6   : > { %3400 = vmatprep.mubr.msk.bf16.mxu1 %vm3710_vm1, %v3709_v11  ;;  %3397 = vmatpush3.bf16.msra.mxu1 %v3533_v46  ;;  %v3546_v46 = vld [vmem:[%s4451_s10 + $0x40] sm:$0xff]  }
 0xdc7   : > { %3398 = vmatprep.subr.bf16.mxu1 %v3709_v11 }
 0xdca   : > { %3399 = vmatpush3.bf16.msra.mxu1 %v3535_v49  ;;  %v3547_v49 = vld [vmem:[%s4451_s10 + $0x48] sm:$0xff]  }
 0xdcb   : > { %3412 = vmatprep.subr.bf16.mxu1 %v3709_v11 }
 0xdf8   : > { %v2332_v33 = vpop.xlane.xlu1 %2331 }
 0xdfb   : > { %v2335_v32 = vpop.xlane.xlu0 %2334 }
 0xdfc   : > { %v2336_v34 = vadd.f32 %v2335_v32, %v2332_v33 }
 0xe98   : > { %v2314_v23 = vpop.f32.mrb[56].mxu1 }
 0xe99   : > { %v2320_v26 = vadd.f32 %v4081_v47, %v2314_v23  ;;  %v3386_v27 = vpop.f32.mrb[57].mxu1  ;;  %v3544_v23 = vld [vmem:[%s4451_s10 + $0x18] sm:$0xff]  }
 0xe9a   : > { %v2317_v28 = vpop.f32.mrb[58].mxu1 }
 0xe9b   : > { %v4275_v29 = vadd.f32 %v3044_v25, %v2320_v26  ;;  %v3387_v30 = vpop.f32.mrb[59].mxu1  ;;  %v3545_v25 = vld [vmem:[%s4451_s10 + $0x38] sm:$0xff]  }
 0xe9d   : > { %v2337_v31 = vsel %vm473_vm0, %v4275_v29, 0.0 }
 0xe9e   : > { %2338 = vadd.xlane.f32.xlu0 %v2337_v31 }
 0xf2b   : > { %v2339_v20 = vpop.xlane.xlu0 %2338 }
 0xf2c   : > { %v2340_v35 = vadd.f32 %v2339_v20, %v2336_v34 }
 0xf2e   : > { %v2341_v24 = vmul.f32 0.010416667, %v2340_v35 }
 0xf30   : > { %v2343_v36 = vsub.f32 %v4259_v13, %v2341_v24  ;;  %v2342_v38 = vsub.f32 %v4254_v10, %v2341_v24  ;;  %v2344_v47 = vsub.f32 %v4275_v29, %v2341_v24  ;;  %v3064_v24 = vld [vmem:[%s4450_s9] ss:$0 sm:$0xff] }
 0xf32   : > { %v2349_v15 = vmul.f32 %v2343_v36, %v2343_v36  ;;  %v2345_v39 = vmul.f32 %v2342_v38, %v2342_v38  ;;  %v2354_v43 = vmul.f32 %v2344_v47, %v2344_v47 }
 0xf34   : > { %v2350_v40 = vsel %vm473_vm0, %v2349_v15, 0.0  ;;  %v2346_v41 = vsel %vm473_vm0, %v2345_v39, 0.0  ;;  %v2355_v44 = vsel %vm473_vm0, %v2354_v43, 0.0 }
 0xf35   : > { %2351 = vadd.xlane.f32.xlu0 %v2350_v40  ;;  %2347 = vadd.xlane.f32.xlu1 %v2346_v41 }
 0xf39   : > { %2356 = vadd.xlane.f32.xlu1 %v2355_v44 }
 0xfc2   : > { %v2352_v50 = vpop.xlane.xlu0 %2351  ;;  %v2348_v51 = vpop.xlane.xlu1 %2347 }
 0xfc3   : > { %v2353_v52 = vadd.f32 %v2352_v50, %v2348_v51  ;;  %v3548_v50 = vld [vmem:[%s4451_s10 + $0x50] sm:$0xff]   ;;  %v3549_v51 = vld [vmem:[%s4451_s10 + $0x58] sm:$0xff]  }
 0xfc6   : > { %v2357_v53 = vpop.xlane.xlu1 %2356 }
 0xfc7   : > { %v2358_v54 = vadd.f32 %v2357_v53, %v2353_v52  ;;  %v3070_v53 = vld [vmem:[%s4452_s11] ss:$0 sm:$0xff] }
 0xfc9   : > { %v2359_v55 = vmul.f32 0.010416667, %v2358_v54 }
 0xfcb   : > { %v2360_v56 = vadd.f32 1e-05, %v2359_v55  ;;  %v3085_v55 = vld [vmem:[%s4452_s11 + $0x1] ss:$0 sm:$0xff] }
 0xfcd   : > { %3604 = vrsqrt.f32 %v2360_v56 }
 0xfd7   : > { %v3605_v57 = vpop.eup %3604 }
 0xfd8   : > { %v2384_v60 = vmul.f32 %v3605_v57, %v2343_v36  ;;  %v2362_v61 = vmul.f32 %v3605_v57, %v2342_v38  ;;  %v2519_v2 = vmul.f32 %v3605_v57, %v2344_v47 }
 0xfda   : > { %v2393_v0 = vmul.f32 %v3048_v58, %v2384_v60  ;;  %v2370_v1 = vmul.f32 %v3045_v59, %v2362_v61  ;;  %v2528_v9 = vmul.f32 %v3058_v3, %v2519_v2 }
 0xfdc   : > { %v2402_v4 = vadd.f32 %v3050_v62, %v2393_v0  ;;  %v2378_v5 = vadd.f32 %v3046_v63, %v2370_v1  ;;  %v2537_v37 = vadd.f32 %v3060_v12, %v2528_v9 }
 0xfde   : > { %v2403_v7 = vpack.c.bf16 %v2402_v4, %v2402_v4  ;;  %v2379_v8 = vpack.c.bf16 %v2378_v5, %v2378_v5  ;;  %v2538_v16 = vpack.c.bf16 %v2537_v37, %v2537_v37 }
 0xfe0   : > { %3393 = vmatmul.mubr.msk.bf16.vlgmr.msra.gmra.mrb[60].mxu0 %vm473_vm0, %v2403_v7  ;;  %3401 = vmatmul.mubr.msk.bf16.vlgmr.msra.gmra.mrb[60].mxu1 %vm473_vm0, %v2379_v8 }
 0xfe1   : > { %3405 = vmatpush3.bf16.msra.mxu0 %v3536_v6  ;;  %3408 = vmatprep.mubr.msk.bf16.mxu0 %vm3710_vm1, %v3709_v11 }
 0xfe2   : > { %3406 = vmatprep.subr.bf16.mxu0 %v3709_v11  ;;  %3420 = vmatprep.mubr.msk.bf16.mxu1 %vm3710_vm1, %v3709_v11 }
 0xfe3   : > { %3413 = vmatpush3.bf16.msra.mxu1 %v3538_v17 }
 0xfe4   : > { %3414 = vmatprep.subr.bf16.mxu1 %v3709_v11 }
 0xfe5   : > { %3407 = vmatpush3.bf16.msra.mxu0 %v3537_v14 }
 0xfe6   : > { %3424 = vmatprep.subr.bf16.mxu0 %v3709_v11 }
 0xfe7   : > { %3415 = vmatpush3.bf16.msra.mxu1 %v3540_v18 }
 0xfe8   : > { %3409 = vmatmul.mubr.msk.bf16.vlgmr.msra.gmra.mrb[64].mxu0 %vm473_vm0, %v2538_v16  ;;  %3416 = vmatprep.subr.bf16.mxu1 %v3709_v11 }
 0xfe9   : > { %3432 = vmatprep.mubr.msk.bf16.mxu0 %vm3710_vm1, %v3709_v11  ;;  %3425 = vmatpush3.bf16.msra.mxu0 %v3539_v42 }
 0xfea   : > { %3426 = vmatprep.subr.bf16.mxu0 %v3709_v11 }
 0xfeb   : > { %3417 = vmatpush3.bf16.msra.mxu1 %v3542_v21 }
 0xfec   : > { %3418 = vmatprep.subr.bf16.mxu1 %v3709_v11 }
 0xfed   : > { %3427 = vmatpush3.bf16.msra.mxu0 %v3541_v19 }
 0xfee   : > { %3428 = vmatprep.subr.bf16.mxu0 %v3709_v11 }
 0xfef   : > { %3419 = vmatpush3.bf16.msra.mxu1 %v3544_v23 }
 0xff0   : > { %3436 = vmatprep.subr.bf16.mxu1 %v3709_v11 }
 0xff1   : > { %3429 = vmatpush3.bf16.msra.mxu0 %v3543_v22 }
 0xff2   : > { %3430 = vmatprep.subr.bf16.mxu0 %v3709_v11 }
 0xff5   : > { %3431 = vmatpush3.bf16.msra.mxu0 %v3545_v25 }
0x10b3   : > { %v2458_v26 = vpop.f32.mrb[60].mxu0  ;;  %v2513_v27 = vpop.f32.mrb[60].mxu1 }
0x10b4   : > { %v2514_v28 = vadd.f32 %v2513_v27, %v2458_v26  ;;  %v3394_v30 = vpop.f32.mrb[61].mxu0  ;;  %v3402_v31 = vpop.f32.mrb[61].mxu1 }
0x10b5   : > { %v2461_v32 = vpop.f32.mrb[62].mxu0  ;;  %v2516_v33 = vpop.f32.mrb[62].mxu1 }
0x10b6   : > { %v3395_v34 = vpop.f32.mrb[63].mxu0  ;;  %v3403_v20 = vpop.f32.mrb[63].mxu1 }
0x10bb   : > { %v2593_v35 = vpop.f32.mrb[64].mxu0 }
0x10bc   : > { %v2599_v36 = vadd.f32 %v2593_v35, %v2514_v28  ;;  %v3410_v38 = vpop.f32.mrb[65].mxu0 }
0x10bd   : > { %v2596_v47 = vpop.f32.mrb[66].mxu0 }
0x10be   : > { %v2607_v15 = vadd.f32 %v3064_v24, %v2599_v36  ;;  %v3411_v39 = vpop.f32.mrb[67].mxu0 }
0x10c0   : > { %v2609_v40 = vmul.f32 0.70710677, %v2607_v15  ;;  %v2608_v43 = vmul.f32 0.5, %v2607_v15 }
0x10c2   : > { %3606 = verf.f32 %v2609_v40 }
0x10cc   : > { %v3607_v41 = vpop.eup %3606 }
0x10cd   : > { %v2611_v44 = vadd.f32 1.0, %v3607_v41 }
0x10cf   : > { %v2612_v45 = vmul.f32 %v2611_v44, %v2608_v43 }
0x10d1   : > { %v2613_v48 = vpack.c.bf16 %v2612_v45, %v2612_v45 }
0x10d3   : > { %3421 = vmatmul.mubr.msk.bf16.vlgmr.msra.gmra.mrb[64].mxu1 %vm2646_vm6, %v2613_v48  ;;  %3433 = vmatmul.mubr.msk.bf16.vlgmr.msra.gmra.mrb[68].mxu0 %vm2646_vm6, %v2613_v48 }
0x10d4   : > { %3437 = vmatpush3.bf16.msra.mxu1 %v3546_v46  ;;  %3444 = vmatprep.mubr.msk.bf16.mxu1 %vm3710_vm1, %v3709_v11 }
0x10d5   : > { %3438 = vmatprep.subr.bf16.mxu1 %v3709_v11 }
0x10d8   : > { %3439 = vmatpush3.bf16.msra.mxu1 %v3547_v49 }
0x10d9   : > { %3440 = vmatprep.subr.bf16.mxu1 %v3709_v11 }
0x10dc   : > { %3441 = vmatpush3.bf16.msra.mxu1 %v3548_v50 }
0x10dd   : > { %3442 = vmatprep.subr.bf16.mxu1 %v3709_v11 }
0x10e0   : > { %3443 = vmatpush3.bf16.msra.mxu1 %v3549_v51 }
0x10e3   : > { %3445 = vmatmul.mubr.msk.bf16.vlgmr.msra.gmra.mrb[68].mxu1 %vm2646_vm6, %v2613_v48 }
0x11a6   : > { %v2684_v52 = vpop.f32.mrb[64].mxu1  ;;  %v2767_v54 = vpop.f32.mrb[68].mxu0 }
0x11a7   : > { %v2690_v56 = vadd.f32 %v2684_v52, %v4254_v10  ;;  %v2773_v57 = vadd.f32 %v2767_v54, %v4259_v13  ;;  %v3422_v11 = vpop.f32.mrb[65].mxu1  ;;  %v3434_v58 = vpop.f32.mrb[69].mxu0  ;;  %v3101_v13 = vld [vmem:[%s4452_s11 + $0x2] ss:$0 sm:$0xff] }
0x11a8   : > { %v2687_v59 = vpop.f32.mrb[66].mxu1  ;;  %v2770_v60 = vpop.f32.mrb[70].mxu0 }
0x11a9   : > { %v2698_v61 = vadd.f32 %v3070_v53, %v2690_v56  ;;  %v2782_v62 = vadd.f32 %v3085_v55, %v2773_v57  ;;  %v3423_v63 = vpop.f32.mrb[67].mxu1  ;;  %v3435_v0 = vpop.f32.mrb[71].mxu0 }
0x11ab   : > { %2699 = vst.msk [vmem:[%s468_s13] sm:$0xff] %vm473_vm0, %v2698_v61  ;;  %3086 = vst.msk [vmem:[%s468_s13 + $0x8] sm:$0xff] %vm473_vm0, %v2782_v62 }
0x11b6   : > { %v2852_v10 = vpop.f32.mrb[68].mxu1 }
0x11b7   : > { %v2858_v1 = vadd.f32 %v2852_v10, %v4275_v29  ;;  %v3446_v2 = vpop.f32.mrb[69].mxu1 }
0x11b8   : > { %v2855_v3 = vpop.f32.mrb[70].mxu1 }
0x11b9   : > { %v2867_v4 = vadd.f32 %v3101_v13, %v2858_v1  ;;  %v3447_v5 = vpop.f32.mrb[71].mxu1 }
0x11bb   : > { %3102 = vst.msk [vmem:[%s468_s13 + $0x10] sm:$0xff] %vm473_vm0, %v2867_v4 }
0x11bc   : > { %3651 = shalt.err (!%p3648_p9)
}
0x11bd   : > { %s3652_s20 = scalar_lea.hbm %s4393_s29, 384  ;;  %s3656_s27 = scalar_lea.hbm %s4525_s26, 768 }
0x11be   : > { %p3653_p13 = scmp.ne.s32.totalorder %s4393_s29, %s3652_s20  ;;  %p3657_p6 = scmp.lt.u32.totalorder %s4393_s29, %s4525_s26 }
0x11bf   : > { %p3658_p10 = scmp.lt.u32.totalorder %s3656_s27, %s3652_s20  ;;  %p3660_p0 = scmp.lt.u32.totalorder %s3652_s20, %s4393_s29 }
0x11c0   : > { %p3654_p2 = pnand %p3653_p13, %p4527_p12 }
0x11c1   : > { %p3659_p11 = por %p3658_p10, %p3657_p6 }
0x11c2   : > { %p3655_p5 = pneg %p3654_p2 }
0x11c3   : > { %p3661_p3 = por %p3660_p0, %p3659_p11 }
0x11c5   : > { %p3662_p4 = pnand %p3661_p3, %p3655_p5 }
0x11c7   : > { %3665 = shalt.err (!%p3662_p4)
}
0x11c8   : > { %s3726_s30 = smov 128   ;;  %s3727_s23 = smov 256  }
0x11c9   : > { %3454 = dma.vmem_to_hbm [thread:$0]  (%p4527_p12), %s4387_s19, 384, %s4393_s29, %s4398_s28, %s3726_s30, %s3727_s23, %s4518_s12  }
0x11ca PF: > { %s4528_s24 = sld [smem:[#allocation9_spill]]  ;;  %s4529_s25 = sld [smem:[#allocation14_spill]] }
0x11d0   : > { %s2898_s8 = sand.u32 1, %s4528_s24   ;;  %p4531_p7 = scmp.ne.s32.totalorder %s4529_s25, 0 }
0x11d1   : > { %s2899_s18 = scalar_lea.sflag [#allocation5], %s2898_s8 }
0x11d2   : > { %p3461_p8 = pnand %p2966_p1, %p4531_p7 }
0x11d4   : > { %3687 = dma.done.wait (!%p3461_p8), %s2899_s18, 384  }
0x11d5   : > { %3689 = vsyncadd (!%p3461_p8), %s2899_s18, 4294966912  ;;  %s4532_s24 = sld [smem:[#allocation12_spill]]  ;;  %s4533_s16 = sld [smem:[#allocation10_spill]] }
0x11d6   : > { %s4534_s23 = sld [smem:[#allocation13_spill]]  ;;  %s4535_s21 = smov %s3696_s22 }
0x11db   : > { %p23_p9 = scmp.ge.s32.totalorder %s4532_s24, 4   ;;  %s4536_s22 = smov %s4533_s16 }
0x11dd   :  { %25 = sbr.rel (!%p23_p9) target bundleno = 8 (0x8), region = 175 }
0x11e4   :  { %2904 = vsyncpa [#allocation4], 1 }
0x11e5   :  { %2906 = vsyncpa [#allocation4 + $0x1], 1 }
0x11e6   :  { %2907 = vsyncpa [#allocation5], 1 }
0x11e7   :  { %2909 = vsyncpa [#allocation5 + $0x1], 1 }

</bundles_post_ra>
